<compile_context>
chip_gen: v6e
topology: v6e:2x2x1
jax: 0.10.0
libtpu: 0.0.40
codegen_flags: <defaults>
</compile_context>

<pallas_src>
import functools

import jax
import jax.numpy as jnp
from jax.experimental import pallas as pl
from jax.experimental.pallas import tpu as pltpu

# ----------------------------- config (small) --------------------------------
IMAGE_SIZE = 32      # original: 256
PATCH_SIZE = 8       # original: 32
CHANNELS = 3
NUM_CLASSES = 64     # original: 512
DIM = 128            # original: 1024
DEPTH = 2            # original: 6
HEADS = 4            # original: 16
DIM_HEAD = 32        # original default: 64
MLP_DIM = 256        # original: 2048
LN_EPS = 1e-5        # torch.nn.LayerNorm default

NC_PAD = max(128, ((NUM_CLASSES + 127) // 128) * 128)   # lane-dense head output

# TODO(synk): dropout / emb_dropout (p=0.1) are identity in eval mode; train-mode RNG
# dropout is not implemented here.


def _default_vmem_limit():
    """Generation-aware VMEM cap (3/4 of physical, <= 80 MiB)."""
    try:
        cap = int(pltpu.get_tpu_info().vmem_capacity_bytes)
    except Exception:
        cap = 64 * 1024 * 1024      # conservative: v7x physical VMEM per TC
    return min((cap * 3) // 4, 80 * 1024 * 1024)


VMEM_LIMIT = _default_vmem_limit()


# ------------------------------ math helpers ----------------------------------

def _ln(x, g, b):
    x = x.astype(jnp.float32)
    mu = jnp.mean(x, axis=-1, keepdims=True)
    var = jnp.mean(jnp.square(x - mu), axis=-1, keepdims=True)
    return (x - mu) * jax.lax.rsqrt(var + LN_EPS) * g + b


def _gelu_tanh(x):
    # tanh-form GELU: the tanh lands on the EUP slot instead of a ~10-op VALU erf poly.
    c = 0.7978845608028654  # sqrt(2/pi)
    return 0.5 * x * (1.0 + jnp.tanh(c * (x + 0.044715 * x * x * x)))


# ------------------------------ Pallas kernels --------------------------------

def _patch_embed_kernel(n_patches, x_ref, g0, b0, w_ref, pb_ref, g1, b1,
                        cls_ref, pos_ref, o_ref):
    """Per batch element: LN(patch_dim) -> Linear -> LN(dim), then fold in the
    cls token, positional embedding and token padding (writes (N_pad, D) f32)."""
    x = x_ref[0].astype(jnp.float32)                                 # (n_patches, pdim)
    h = _ln(x, g0[...], b0[...])
    e = jnp.dot(h.astype(jnp.bfloat16), w_ref[...],
                preferred_element_type=jnp.float32) + pb_ref[...]
    e = _ln(e, g1[...], b1[...])                                     # (n_patches, D)

    n_pad = o_ref.shape[1]
    d = e.shape[1]
    parts = [cls_ref[0].astype(jnp.float32), e]                      # cls row + patches
    pad_rows = n_pad - 1 - n_patches
    if pad_rows > 0:
        parts.append(jnp.zeros((pad_rows, d), jnp.float32))          # padded tokens
    full = jnp.concatenate(parts, axis=0)                            # (N_pad, D)
    o_ref[0] = (full + pos_ref[0]).astype(o_ref.dtype)               # pos_emb pre-padded


def _transformer_kernel(n_real, heads, dim_head, scale,
                        x_ref, aln_g, aln_b, qkv_w, wo_ref, ob_ref,
                        fln_g, fln_b, w1, b1, w2, b2,
                        gln_g, gln_b, head_w, head_b,
                        logits_ref, resid):
    """Whole encoder for one batch block: all layers (grid axis 1, "arbitrary"),
    residual stream resident in a f32 VMEM scratch, final LN + head at the last layer."""
    l = pl.program_id(1)
    n_layers = pl.num_programs(1)
    bsz, n_tok, d = x_ref.shape
    m = bsz * n_tok
    inner = heads * dim_head

    # layer 0: load this batch block's token stream into the f32 residual scratch
    @pl.when(l == 0)
    def _():
        resid[...] = x_ref[...]

    x = resid[...].reshape(m, d)                 # (M, D) f32, batch flattened into M

    # ---------------- attention block: x += W_o . MHSA(LN(x)) -------------------
    h = _ln(x, aln_g[0], aln_b[0])
    qkv = jnp.dot(h.astype(jnp.bfloat16), qkv_w[0],
                  preferred_element_type=jnp.float32)               # (M, 3*inner)
    qkv = qkv.reshape(bsz, n_tok, 3 * inner)

    key_mask = jax.lax.broadcasted_iota(jnp.int32, (1, 1, n_tok), 2) < n_real
    neg = jnp.float32(-1e30)
    wo = wo_ref[0]                                                   # (inner, D) bf16

    y = jnp.zeros((m, d), jnp.float32)
    for hi in range(heads):                       # static unroll; batched 3-D matmuls
        s0, s1 = hi * dim_head, (hi + 1) * dim_head
        q = qkv[:, :, s0:s1].astype(jnp.bfloat16)
        k = qkv[:, :, inner + s0:inner + s1].astype(jnp.bfloat16)
        v = qkv[:, :, 2 * inner + s0:2 * inner + s1].astype(jnp.bfloat16)
        s = jax.lax.dot_general(q, k, (((2,), (2,)), ((0,), (0,))),
                                preferred_element_type=jnp.float32) * scale   # (b,N,N)
        s = jnp.where(key_mask, s, neg)           # mask padded key tokens
        s = s - jnp.max(s, axis=-1, keepdims=True)
        e = jnp.exp(s)
        denom = jnp.sum(e, axis=-1, keepdims=True)
        pattn = e * pl.reciprocal(denom, approx=True)                # divide -> EUP
        o_h = jax.lax.dot_general(pattn.astype(jnp.bfloat16), v,
                                  (((2,), (1,)), ((0,), (0,))),
                                  preferred_element_type=jnp.float32)  # (b, N, dh)
        # accumulate straight through this head's slice of the output projection
        # (removes the lane-concat of head outputs)
        y = y + jnp.dot(o_h.reshape(m, dim_head).astype(jnp.bfloat16),
                        wo[s0:s1, :], preferred_element_type=jnp.float32)
    x = x + y + ob_ref[0]                         # residual add in f32

    # ---------------- MLP block: x += W2 . GELU(W1 . LN(x)) ---------------------
    h = _ln(x, fln_g[0], fln_b[0])
    h = jnp.dot(h.astype(jnp.bfloat16), w1[0],
                preferred_element_type=jnp.float32) + b1[0]
    h = _gelu_tanh(h)
    x = x + jnp.dot(h.astype(jnp.bfloat16), w2[0],
                    preferred_element_type=jnp.float32) + b2[0]

    # NOTE: padded query rows carry garbage-but-finite values; only the cls row is read.
    resid[...] = x.reshape(bsz, n_tok, d)

    # ---------------- last layer: final LN + classification head ----------------
    @pl.when(l == n_layers - 1)
    def _():
        cls_tok = jnp.concatenate(
            [x[i * n_tok:i * n_tok + 1, :] for i in range(bsz)], axis=0)   # (bsz, D)
        hh = _ln(cls_tok, gln_g[...], gln_b[...])
        logits_ref[0] = jnp.dot(hh.astype(jnp.bfloat16), head_w[...],
                                preferred_element_type=jnp.float32) + head_b[...]


# ------------------------------ kernel wrappers --------------------------------

def patch_embed(patches, p, n_pad):
    """patches: (B, n_patches, patch_dim) bf16 -> (B, n_pad, DIM) f32 token stream
    (cls token, positional embedding and padding already applied)."""
    B, n_patches, pdim = patches.shape
    v2 = lambda b: (0, 0)
    v3 = lambda b: (0, 0, 0)
    kernel = functools.partial(_patch_embed_kernel, n_patches)
    return pl.pallas_call(
        kernel,
        out_shape=jax.ShapeDtypeStruct((B, n_pad, DIM), jnp.float32),
        grid=(B,),                                  # >=2 parallel points for v7x's 2nd TC
        in_specs=[pl.BlockSpec((1, n_patches, pdim), lambda b: (b, 0, 0)),
                  pl.BlockSpec((1, pdim), v2),
                  pl.BlockSpec((1, pdim), v2),
                  pl.BlockSpec((pdim, DIM), v2),
                  pl.BlockSpec((1, DIM), v2),
                  pl.BlockSpec((1, DIM), v2),
                  pl.BlockSpec((1, DIM), v2),
                  pl.BlockSpec((1, 1, DIM), v3),
                  pl.BlockSpec((1, n_pad, DIM), v3)],
        out_specs=pl.BlockSpec((1, n_pad, DIM), lambda b: (b, 0, 0)),
        compiler_params=pltpu.CompilerParams(
            dimension_semantics=("parallel",), vmem_limit_bytes=VMEM_LIMIT),
    )(patches, p["patch_ln0_g"], p["patch_ln0_b"], p["patch_w"], p["patch_b"],
      p["patch_ln1_g"], p["patch_ln1_b"], p["cls"], p["pos_emb"])


def transformer_and_head(tokens, p, n_real):
    """tokens: (B, N_pad, DIM) f32 -> (B, NC_PAD) f32 logits.
    One pallas_call for all layers + final LN + head; grid = (batch blocks, depth)."""
    B, N, D = tokens.shape
    depth = p["qkv_w"].shape[0]
    inner = HEADS * DIM_HEAD
    mlp = p["ff_w1"].shape[2]
    # 2 batch blocks when possible -> "parallel" axis feeds the 2nd TC on v7x;
    # within a block the batch is flattened into the matmul M dimension.
    n_bb = 2 if (B >= 2 and B % 2 == 0) else 1
    b_blk = B // n_bb
    scale = DIM_HEAD ** -0.5
    kernel = functools.partial(_transformer_kernel, n_real, HEADS, DIM_HEAD, scale)

    xmap = lambda bb, l: (bb, 0, 0)
    lyr = lambda bb, l: (l, 0, 0)
    cst2 = lambda bb, l: (0, 0)

    m = b_blk * N
    flops = n_bb * depth * (2 * m * D * 3 * inner
                            + 4 * b_blk * HEADS * N * N * DIM_HEAD
                            + 2 * m * inner * D
                            + 4 * m * D * mlp) + 2 * B * D * NC_PAD
    transc = n_bb * depth * (b_blk * HEADS * N * N + m * mlp)
    bytes_acc = (B * N * D * 4 + B * NC_PAD * 4 + D * NC_PAD * 2
                 + n_bb * depth * (D * 3 * inner + inner * D + 2 * D * mlp) * 2)
    cost = pl.CostEstimate(flops=int(flops), transcendentals=int(transc),
                           bytes_accessed=int(bytes_acc))

    out = pl.pallas_call(
        kernel,
        out_shape=jax.ShapeDtypeStruct((n_bb, b_blk, NC_PAD), jnp.float32),
        grid=(n_bb, depth),
        in_specs=[
            pl.BlockSpec((b_blk, N, D), xmap),            # token stream (read at l == 0)
            pl.BlockSpec((1, 1, D), lyr),                 # attn LN gamma
            pl.BlockSpec((1, 1, D), lyr),                 # attn LN beta
            pl.BlockSpec((1, D, 3 * inner), lyr),         # qkv_w (per layer)
            pl.BlockSpec((1, inner, D), lyr),             # out_w
            pl.BlockSpec((1, 1, D), lyr),                 # out_b
            pl.BlockSpec((1, 1, D), lyr),                 # ff LN gamma
            pl.BlockSpec((1, 1, D), lyr),                 # ff LN beta
            pl.BlockSpec((1, D, mlp), lyr),               # ff_w1
            pl.BlockSpec((1, 1, mlp), lyr),               # ff_b1
            pl.BlockSpec((1, mlp, D), lyr),               # ff_w2
            pl.BlockSpec((1, 1, D), lyr),                 # ff_b2
            pl.BlockSpec((1, D), cst2),                   # final LN gamma (fetched once)
            pl.BlockSpec((1, D), cst2),                   # final LN beta
            pl.BlockSpec((D, NC_PAD), cst2),              # head_w
            pl.BlockSpec((1, NC_PAD), cst2),              # head_b
        ],
        out_specs=pl.BlockSpec((1, b_blk, NC_PAD), lambda bb, l: (bb, 0, 0)),
        scratch_shapes=[pltpu.VMEM((b_blk, N, D), jnp.float32)],   # f32 residual stream
        compiler_params=pltpu.CompilerParams(
            dimension_semantics=("parallel", "arbitrary"),
            vmem_limit_bytes=VMEM_LIMIT),
        cost_estimate=cost,
    )(tokens, p["attn_ln_g"], p["attn_ln_b"], p["qkv_w"], p["out_w"], p["out_b"],
      p["ff_ln_g"], p["ff_ln_b"], p["ff_w1"], p["ff_b1"], p["ff_w2"], p["ff_b2"],
      p["final_ln_g"], p["final_ln_b"], p["head_w"], p["head_b"])
    return out.reshape(B, NC_PAD)


# ------------------------------ parameters --------------------------------

def init_vit_params(key):
    patch_dim = CHANNELS * PATCH_SIZE * PATCH_SIZE
    n_patches = (IMAGE_SIZE // PATCH_SIZE) ** 2
    n_tok = n_patches + 1
    n_pad = ((n_tok + 7) // 8) * 8
    inner = HEADS * DIM_HEAD
    keys = iter(jax.random.split(key, 16))

    def nrm(shape, std=0.02, dtype=jnp.bfloat16):
        # matmul weights stored in bf16 (halves HBM traffic, full-rate MXU)
        return (std * jax.random.normal(next(keys), shape, dtype=jnp.float32)).astype(dtype)

    pos = nrm((1, n_tok, DIM), dtype=jnp.float32)
    pos = jnp.pad(pos, ((0, 0), (0, n_pad - n_tok), (0, 0)))         # pre-padded tokens
    head_w = jnp.pad(nrm((DIM, NUM_CLASSES)), ((0, 0), (0, NC_PAD - NUM_CLASSES)))

    return {
        "patch_ln0_g": jnp.ones((1, patch_dim), jnp.float32),
        "patch_ln0_b": jnp.zeros((1, patch_dim), jnp.float32),
        "patch_w": nrm((patch_dim, DIM)),
        "patch_b": jnp.zeros((1, DIM), jnp.float32),
        "patch_ln1_g": jnp.ones((1, DIM), jnp.float32),
        "patch_ln1_b": jnp.zeros((1, DIM), jnp.float32),
        "cls": nrm((1, 1, DIM), dtype=jnp.float32),
        "pos_emb": pos,
        # per-layer weights stacked on a leading DEPTH axis for the depth-fused kernel
        "attn_ln_g": jnp.ones((DEPTH, 1, DIM), jnp.float32),
        "attn_ln_b": jnp.zeros((DEPTH, 1, DIM), jnp.float32),
        "qkv_w": nrm((DEPTH, DIM, 3 * inner)),          # Linear(dim, inner*3, bias=False)
        "out_w": nrm((DEPTH, inner, DIM)),
        "out_b": jnp.zeros((DEPTH, 1, DIM), jnp.float32),
        "ff_ln_g": jnp.ones((DEPTH, 1, DIM), jnp.float32),
        "ff_ln_b": jnp.zeros((DEPTH, 1, DIM), jnp.float32),
        "ff_w1": nrm((DEPTH, DIM, MLP_DIM)),
        "ff_b1": jnp.zeros((DEPTH, 1, MLP_DIM), jnp.float32),
        "ff_w2": nrm((DEPTH, MLP_DIM, DIM)),
        "ff_b2": jnp.zeros((DEPTH, 1, DIM), jnp.float32),
        "final_ln_g": jnp.ones((1, DIM), jnp.float32),
        "final_ln_b": jnp.zeros((1, DIM), jnp.float32),
        "head_w": head_w,
        "head_b": jnp.zeros((1, NC_PAD), jnp.float32),
    }


# ------------------------------ forward pass --------------------------------

def vit_forward(p, img):
    """One ViT encoder.  img: (B, C, H, W) NCHW float32 -> (B, NUM_CLASSES) float32."""
    B, C, H, W = img.shape
    ps = PATCH_SIZE
    gh, gw = H // ps, W // ps
    n_patches = gh * gw
    n_tok = n_patches + 1
    n_pad = p["pos_emb"].shape[1]

    # Rearrange('b c (h p1) (w p2) -> b (h w) (p1 p2 c)')  -- pure layout glue (XLA)
    x = img.reshape(B, C, gh, ps, gw, ps)
    x = jnp.transpose(x, (0, 2, 4, 3, 5, 1)).reshape(B, n_patches, ps * ps * C)
    x = x.astype(jnp.bfloat16)                           # halve patch DMA into the kernel

    tokens = patch_embed(x, p, n_pad)                    # LN->Linear->LN + cls/pos/pad, fused
    logits = transformer_and_head(tokens, p, n_tok)     # all layers + final LN + head, fused
    return logits[:, :NUM_CLASSES]


def vit_module_forward(params_query, params_ref, q, r, isTrain=True, isQuery=True):
    """Mirrors VIT.forward(q, r, isTrain, isQuery)."""
    if isTrain:
        return vit_forward(params_query, q), vit_forward(params_ref, r)
    elif isQuery:
        return vit_forward(params_query, q)
    else:
        return vit_forward(params_ref, r)


# ------------------------------ demo --------------------------------

if __name__ == "__main__":
    key = jax.random.PRNGKey(0)
    kq, kr, kx1, kx2 = jax.random.split(key, 4)

    params_query = init_vit_params(kq)
    params_ref = init_vit_params(kr)

    q = jax.random.normal(kx1, (2, CHANNELS, IMAGE_SIZE, IMAGE_SIZE), dtype=jnp.float32)
    r = jax.random.normal(kx2, (2, CHANNELS, IMAGE_SIZE, IMAGE_SIZE), dtype=jnp.float32)

    fwd = jax.jit(lambda pq, pr, a, b: vit_module_forward(pq, pr, a, b, isTrain=True))
    out_q, out_r = fwd(params_query, params_ref, q, r)
    jax.block_until_ready((out_q, out_r))

    assert out_q.shape == (2, NUM_CLASSES) and out_r.shape == (2, NUM_CLASSES)
    assert out_q.dtype == jnp.float32 and out_r.dtype == jnp.float32
    assert bool(jnp.all(jnp.isfinite(out_q))) and bool(jnp.all(jnp.isfinite(out_r)))
    print("KERNEL_OK")
</pallas_src>

<mosaic_0001>
module attributes {stable_mosaic.version = 11 : i64} {
  func.func @_transformer_kernel(%arg0: i32, %arg1: i32, %arg2: memref<1x24x128xf32, #tpu.memory_space<vmem>>, %arg3: memref<1x1x128xf32, #tpu.memory_space<vmem>>, %arg4: memref<1x1x128xf32, #tpu.memory_space<vmem>>, %arg5: memref<1x128x384xbf16, #tpu.memory_space<vmem>>, %arg6: memref<1x128x128xbf16, #tpu.memory_space<vmem>>, %arg7: memref<1x1x128xf32, #tpu.memory_space<vmem>>, %arg8: memref<1x1x128xf32, #tpu.memory_space<vmem>>, %arg9: memref<1x1x128xf32, #tpu.memory_space<vmem>>, %arg10: memref<1x128x256xbf16, #tpu.memory_space<vmem>>, %arg11: memref<1x1x256xf32, #tpu.memory_space<vmem>>, %arg12: memref<1x256x128xbf16, #tpu.memory_space<vmem>>, %arg13: memref<1x1x128xf32, #tpu.memory_space<vmem>>, %arg14: memref<1x128xf32, #tpu.memory_space<vmem>>, %arg15: memref<1x128xf32, #tpu.memory_space<vmem>>, %arg16: memref<128x128xbf16, #tpu.memory_space<vmem>>, %arg17: memref<1x128xf32, #tpu.memory_space<vmem>>, %arg18: memref<1x1x128xf32, #tpu.memory_space<vmem>>, %arg19: memref<1x24x128xf32, #tpu.memory_space<vmem>>) attributes {dimension_semantics = [#tpu.dimension_semantics<parallel>, #tpu.dimension_semantics<arbitrary>], iteration_bounds = array<i64: 2, 2>, scalar_prefetch = 0 : i64, scratch_operands = 1 : i64, tpu.core_type = #tpu.core_type<tc>, window_params = [{transform_indices = @transform_0, window_bounds = array<i64: 1, 24, 128>}, {transform_indices = @transform_1, window_bounds = array<i64: 1, 1, 128>}, {transform_indices = @transform_2, window_bounds = array<i64: 1, 1, 128>}, {transform_indices = @transform_3, window_bounds = array<i64: 1, 128, 384>}, {transform_indices = @transform_4, window_bounds = array<i64: 1, 128, 128>}, {transform_indices = @transform_5, window_bounds = array<i64: 1, 1, 128>}, {transform_indices = @transform_6, window_bounds = array<i64: 1, 1, 128>}, {transform_indices = @transform_7, window_bounds = array<i64: 1, 1, 128>}, {transform_indices = @transform_8, window_bounds = array<i64: 1, 128, 256>}, {transform_indices = @transform_9, window_bounds = array<i64: 1, 1, 256>}, {transform_indices = @transform_10, window_bounds = array<i64: 1, 256, 128>}, {transform_indices = @transform_11, window_bounds = array<i64: 1, 1, 128>}, {pipeline_mode = #tpu.pipeline_mode<synchronous>, transform_indices = @transform_12, window_bounds = array<i64: 1, 128>}, {pipeline_mode = #tpu.pipeline_mode<synchronous>, transform_indices = @transform_13, window_bounds = array<i64: 1, 128>}, {pipeline_mode = #tpu.pipeline_mode<synchronous>, transform_indices = @transform_14, window_bounds = array<i64: 128, 128>}, {pipeline_mode = #tpu.pipeline_mode<synchronous>, transform_indices = @transform_15, window_bounds = array<i64: 1, 128>}, {transform_indices = @transform_16, window_bounds = array<i64: 1, 1, 128>}]} {
    %c0_i32 = arith.constant 0 : i32
    %0 = arith.cmpi eq, %arg1, %c0_i32 : i32
    %1 = arith.extui %0 : i1 to i32
    %c0_i32_0 = arith.constant 0 : i32
    %2 = arith.cmpi ne, %1, %c0_i32_0 : i32
    scf.if %2 {
      %c0_85 = arith.constant 0 : index
      %c0_86 = arith.constant 0 : index
      %c0_87 = arith.constant 0 : index
      %228 = vector.load %arg2[%c0_85, %c0_86, %c0_87] : memref<1x24x128xf32, #tpu.memory_space<vmem>>, vector<1x24x128xf32>
      %c0_88 = arith.constant 0 : index
      %c0_89 = arith.constant 0 : index
      %c0_90 = arith.constant 0 : index
      %229 = vector.load %arg19[%c0_88, %c0_89, %c0_90] : memref<1x24x128xf32, #tpu.memory_space<vmem>>, vector<1x24x128xf32>
      tpu.vector_store %arg19[%c0_88, %c0_89, %c0_90], %228 {strides = array<i32>} : memref<1x24x128xf32, #tpu.memory_space<vmem>>, vector<1x24x128xf32>,
    } else {
    }
    %c0 = arith.constant 0 : index
    %c0_1 = arith.constant 0 : index
    %c0_2 = arith.constant 0 : index
    %3 = vector.load %arg19[%c0, %c0_1, %c0_2] : memref<1x24x128xf32, #tpu.memory_space<vmem>>, vector<1x24x128xf32>
    %4 = vector.shape_cast %3 : vector<1x24x128xf32> to vector<24x128xf32>
    %c0_3 = arith.constant 0 : index
    %c0_4 = arith.constant 0 : index
    %c0_5 = arith.constant 0 : index
    %5 = vector.load %arg3[%c0_3, %c0_4, %c0_5] : memref<1x1x128xf32, #tpu.memory_space<vmem>>, vector<1x1x128xf32>
    %6 = vector.shape_cast %5 : vector<1x1x128xf32> to vector<1x128xf32>
    %c0_6 = arith.constant 0 : index
    %c0_7 = arith.constant 0 : index
    %c0_8 = arith.constant 0 : index
    %7 = vector.load %arg4[%c0_6, %c0_7, %c0_8] : memref<1x1x128xf32, #tpu.memory_space<vmem>>, vector<1x1x128xf32>
    %8 = vector.shape_cast %7 : vector<1x1x128xf32> to vector<1x128xf32>
    %cst = arith.constant dense<0.000000e+00> : vector<24xf32>
    %9 = vector.multi_reduction <add>, %4, %cst [1] : vector<24x128xf32> to vector<24xf32>
    %10 = vector.shape_cast %9 : vector<24xf32> to vector<24x1xf32>
    %cst_9 = arith.constant 1.280000e+02 : f32
    %11 = vector.broadcast %cst_9 : f32 to vector<24x1xf32>
    %12 = arith.divf %10, %11 : vector<24x1xf32>
    %13 = vector.broadcast %12 : vector<24x1xf32> to vector<24x128xf32>
    %14 = arith.subf %4, %13 : vector<24x128xf32>
    %15 = arith.mulf %14, %14 : vector<24x128xf32>
    %cst_10 = arith.constant dense<0.000000e+00> : vector<24xf32>
    %16 = vector.multi_reduction <add>, %15, %cst_10 [1] : vector<24x128xf32> to vector<24xf32>
    %17 = vector.shape_cast %16 : vector<24xf32> to vector<24x1xf32>
    %cst_11 = arith.constant 1.280000e+02 : f32
    %18 = vector.broadcast %cst_11 : f32 to vector<24x1xf32>
    %19 = arith.divf %17, %18 : vector<24x1xf32>
    %20 = vector.broadcast %12 : vector<24x1xf32> to vector<24x128xf32>
    %21 = arith.subf %4, %20 : vector<24x128xf32>
    %cst_12 = arith.constant 9.99999974E-6 : f32
    %22 = vector.broadcast %cst_12 : f32 to vector<24x1xf32>
    %23 = arith.addf %19, %22 : vector<24x1xf32>
    %24 = math.rsqrt %23 : vector<24x1xf32>
    %25 = vector.broadcast %24 : vector<24x1xf32> to vector<24x128xf32>
    %26 = arith.mulf %21, %25 : vector<24x128xf32>
    %27 = vector.broadcast %6 : vector<1x128xf32> to vector<24x128xf32>
    %28 = arith.mulf %26, %27 : vector<24x128xf32>
    %29 = vector.broadcast %8 : vector<1x128xf32> to vector<24x128xf32>
    %30 = arith.addf %28, %29 : vector<24x128xf32>
    %31 = arith.truncf %30 : vector<24x128xf32> to vector<24x128xbf16>
    %c0_13 = arith.constant 0 : index
    %c0_14 = arith.constant 0 : index
    %c0_15 = arith.constant 0 : index
    %32 = vector.load %arg5[%c0_13, %c0_14, %c0_15] : memref<1x128x384xbf16, #tpu.memory_space<vmem>>, vector<1x128x384xbf16>
    %33 = vector.shape_cast %32 : vector<1x128x384xbf16> to vector<128x384xbf16>
    %cst_16 = arith.constant dense<0.000000e+00> : vector<24x384xf32>
    %34 = tpu.matmul %31, %33, %cst_16 {dimension_numbers = #tpu.dot_dimension_numbers<[1], [0], [0], [1], [0, 0, 1, 1], [], []>} : vector<24x128xbf16>, vector<128x384xbf16>, vector<24x384xf32> -> vector<24x384xf32>
    %35 = vector.shape_cast %34 : vector<24x384xf32> to vector<1x24x384xf32>
    %36 = tpu.iota {dimensions = array<i32: 2>} : vector<1x1x24xi32>
    %c17_i32 = arith.constant 17 : i32
    %37 = vector.broadcast %c17_i32 : i32 to vector<1x1x24xi32>
    %38 = arith.cmpi slt, %36, %37 : vector<1x1x24xi32>
    %c0_17 = arith.constant 0 : index
    %c0_18 = arith.constant 0 : index
    %c0_19 = arith.constant 0 : index
    %39 = vector.load %arg6[%c0_17, %c0_18, %c0_19] : memref<1x128x128xbf16, #tpu.memory_space<vmem>>, vector<1x128x128xbf16>
    %40 = vector.shape_cast %39 : vector<1x128x128xbf16> to vector<128x128xbf16>
    %cst_20 = arith.constant 0.000000e+00 : f32
    %41 = vector.broadcast %cst_20 : f32 to vector<24x128xf32>
    %42 = vector.extract_strided_slice %35 {offsets = [0, 0, 0], sizes = [1, 24, 32], strides = [1, 1, 1]} : vector<1x24x384xf32> to vector<1x24x32xf32>
    %43 = arith.truncf %42 : vector<1x24x32xf32> to vector<1x24x32xbf16>
    %44 = vector.extract_strided_slice %35 {offsets = [0, 0, 128], sizes = [1, 24, 32], strides = [1, 1, 1]} : vector<1x24x384xf32> to vector<1x24x32xf32>
    %45 = arith.truncf %44 : vector<1x24x32xf32> to vector<1x24x32xbf16>
    %46 = vector.extract_strided_slice %35 {offsets = [0, 0, 256], sizes = [1, 24, 32], strides = [1, 1, 1]} : vector<1x24x384xf32> to vector<1x24x32xf32>
    %47 = arith.truncf %46 : vector<1x24x32xf32> to vector<1x24x32xbf16>
    %cst_21 = arith.constant dense<0.000000e+00> : vector<1x24x24xf32>
    %48 = tpu.matmul %43, %45, %cst_21 {dimension_numbers = #tpu.dot_dimension_numbers<[2], [2], [1], [1], [0, 0, 0, 1, 1, 1], [0], [0]>} : vector<1x24x32xbf16>, vector<1x24x32xbf16>, vector<1x24x24xf32> -> vector<1x24x24xf32>
    %cst_22 = arith.constant 0.176776692 : f32
    %49 = vector.broadcast %cst_22 : f32 to vector<1x24x24xf32>
    %50 = arith.mulf %48, %49 : vector<1x24x24xf32>
    %cst_23 = arith.constant -1.000000e+30 : f32
    %51 = vector.shape_cast %38 : vector<1x1x24xi1> to vector<1x1x24xi1>
    %52 = vector.broadcast %51 : vector<1x1x24xi1> to vector<1x24x24xi1>
    %53 = vector.broadcast %cst_23 : f32 to vector<1x24x24xf32>
    %54 = arith.select %52, %50, %53 : vector<1x24x24xi1>, vector<1x24x24xf32>
    %cst_24 = arith.constant dense<0xFF800000> : vector<1x24xf32>
    %55 = vector.multi_reduction <maximumf>, %54, %cst_24 [2] : vector<1x24x24xf32> to vector<1x24xf32>
    %56 = vector.shape_cast %55 : vector<1x24xf32> to vector<1x24x1xf32>
    %57 = vector.broadcast %56 : vector<1x24x1xf32> to vector<1x24x24xf32>
    %58 = arith.subf %54, %57 : vector<1x24x24xf32>
    %59 = math.exp %58 : vector<1x24x24xf32>
    %cst_25 = arith.constant dense<0.000000e+00> : vector<1x24xf32>
    %60 = vector.multi_reduction <add>, %59, %cst_25 [2] : vector<1x24x24xf32> to vector<1x24xf32>
    %61 = vector.shape_cast %60 : vector<1x24xf32> to vector<1x24x1xf32>
    %62 = tpu.reciprocal %61 {approx = true} : vector<1x24x1xf32> -> vector<1x24x1xf32>
    %63 = vector.broadcast %62 : vector<1x24x1xf32> to vector<1x24x24xf32>
    %64 = arith.mulf %59, %63 : vector<1x24x24xf32>
    %65 = arith.truncf %64 : vector<1x24x24xf32> to vector<1x24x24xbf16>
    %cst_26 = arith.constant dense<0.000000e+00> : vector<1x24x32xf32>
    %66 = tpu.matmul %65, %47, %cst_26 {dimension_numbers = #tpu.dot_dimension_numbers<[2], [1], [1], [2], [0, 0, 0, 1, 1, 2], [0], [0]>} : vector<1x24x24xbf16>, vector<1x24x32xbf16>, vector<1x24x32xf32> -> vector<1x24x32xf32>
    %67 = vector.shape_cast %66 : vector<1x24x32xf32> to vector<24x32xf32>
    %68 = arith.truncf %67 : vector<24x32xf32> to vector<24x32xbf16>
    %69 = vector.extract_strided_slice %40 {offsets = [0, 0], sizes = [32, 128], strides = [1, 1]} : vector<128x128xbf16> to vector<32x128xbf16>
    %cst_27 = arith.constant dense<0.000000e+00> : vector<24x128xf32>
    %70 = tpu.matmul %68, %69, %cst_27 {dimension_numbers = #tpu.dot_dimension_numbers<[1], [0], [0], [1], [0, 0, 1, 1], [], []>} : vector<24x32xbf16>, vector<32x128xbf16>, vector<24x128xf32> -> vector<24x128xf32>
    %71 = arith.addf %41, %70 : vector<24x128xf32>
    %72 = vector.extract_strided_slice %35 {offsets = [0, 0, 32], sizes = [1, 24, 32], strides = [1, 1, 1]} : vector<1x24x384xf32> to vector<1x24x32xf32>
    %73 = arith.truncf %72 : vector<1x24x32xf32> to vector<1x24x32xbf16>
    %74 = vector.extract_strided_slice %35 {offsets = [0, 0, 160], sizes = [1, 24, 32], strides = [1, 1, 1]} : vector<1x24x384xf32> to vector<1x24x32xf32>
    %75 = arith.truncf %74 : vector<1x24x32xf32> to vector<1x24x32xbf16>
    %76 = vector.extract_strided_slice %35 {offsets = [0, 0, 288], sizes = [1, 24, 32], strides = [1, 1, 1]} : vector<1x24x384xf32> to vector<1x24x32xf32>
    %77 = arith.truncf %76 : vector<1x24x32xf32> to vector<1x24x32xbf16>
    %cst_28 = arith.constant dense<0.000000e+00> : vector<1x24x24xf32>
    %78 = tpu.matmul %73, %75, %cst_28 {dimension_numbers = #tpu.dot_dimension_numbers<[2], [2], [1], [1], [0, 0, 0, 1, 1, 1], [0], [0]>} : vector<1x24x32xbf16>, vector<1x24x32xbf16>, vector<1x24x24xf32> -> vector<1x24x24xf32>
    %cst_29 = arith.constant 0.176776692 : f32
    %79 = vector.broadcast %cst_29 : f32 to vector<1x24x24xf32>
    %80 = arith.mulf %78, %79 : vector<1x24x24xf32>
    %cst_30 = arith.constant -1.000000e+30 : f32
    %81 = vector.shape_cast %38 : vector<1x1x24xi1> to vector<1x1x24xi1>
    %82 = vector.broadcast %81 : vector<1x1x24xi1> to vector<1x24x24xi1>
    %83 = vector.broadcast %cst_30 : f32 to vector<1x24x24xf32>
    %84 = arith.select %82, %80, %83 : vector<1x24x24xi1>, vector<1x24x24xf32>
    %cst_31 = arith.constant dense<0xFF800000> : vector<1x24xf32>
    %85 = vector.multi_reduction <maximumf>, %84, %cst_31 [2] : vector<1x24x24xf32> to vector<1x24xf32>
    %86 = vector.shape_cast %85 : vector<1x24xf32> to vector<1x24x1xf32>
    %87 = vector.broadcast %86 : vector<1x24x1xf32> to vector<1x24x24xf32>
    %88 = arith.subf %84, %87 : vector<1x24x24xf32>
    %89 = math.exp %88 : vector<1x24x24xf32>
    %cst_32 = arith.constant dense<0.000000e+00> : vector<1x24xf32>
    %90 = vector.multi_reduction <add>, %89, %cst_32 [2] : vector<1x24x24xf32> to vector<1x24xf32>
    %91 = vector.shape_cast %90 : vector<1x24xf32> to vector<1x24x1xf32>
    %92 = tpu.reciprocal %91 {approx = true} : vector<1x24x1xf32> -> vector<1x24x1xf32>
    %93 = vector.broadcast %92 : vector<1x24x1xf32> to vector<1x24x24xf32>
    %94 = arith.mulf %89, %93 : vector<1x24x24xf32>
    %95 = arith.truncf %94 : vector<1x24x24xf32> to vector<1x24x24xbf16>
    %cst_33 = arith.constant dense<0.000000e+00> : vector<1x24x32xf32>
    %96 = tpu.matmul %95, %77, %cst_33 {dimension_numbers = #tpu.dot_dimension_numbers<[2], [1], [1], [2], [0, 0, 0, 1, 1, 2], [0], [0]>} : vector<1x24x24xbf16>, vector<1x24x32xbf16>, vector<1x24x32xf32> -> vector<1x24x32xf32>
    %97 = vector.shape_cast %96 : vector<1x24x32xf32> to vector<24x32xf32>
    %98 = arith.truncf %97 : vector<24x32xf32> to vector<24x32xbf16>
    %99 = vector.extract_strided_slice %40 {offsets = [32, 0], sizes = [32, 128], strides = [1, 1]} : vector<128x128xbf16> to vector<32x128xbf16>
    %cst_34 = arith.constant dense<0.000000e+00> : vector<24x128xf32>
    %100 = tpu.matmul %98, %99, %cst_34 {dimension_numbers = #tpu.dot_dimension_numbers<[1], [0], [0], [1], [0, 0, 1, 1], [], []>} : vector<24x32xbf16>, vector<32x128xbf16>, vector<24x128xf32> -> vector<24x128xf32>
    %101 = arith.addf %71, %100 : vector<24x128xf32>
    %102 = vector.extract_strided_slice %35 {offsets = [0, 0, 64], sizes = [1, 24, 32], strides = [1, 1, 1]} : vector<1x24x384xf32> to vector<1x24x32xf32>
    %103 = arith.truncf %102 : vector<1x24x32xf32> to vector<1x24x32xbf16>
    %104 = vector.extract_strided_slice %35 {offsets = [0, 0, 192], sizes = [1, 24, 32], strides = [1, 1, 1]} : vector<1x24x384xf32> to vector<1x24x32xf32>
    %105 = arith.truncf %104 : vector<1x24x32xf32> to vector<1x24x32xbf16>
    %106 = vector.extract_strided_slice %35 {offsets = [0, 0, 320], sizes = [1, 24, 32], strides = [1, 1, 1]} : vector<1x24x384xf32> to vector<1x24x32xf32>
    %107 = arith.truncf %106 : vector<1x24x32xf32> to vector<1x24x32xbf16>
    %cst_35 = arith.constant dense<0.000000e+00> : vector<1x24x24xf32>
    %108 = tpu.matmul %103, %105, %cst_35 {dimension_numbers = #tpu.dot_dimension_numbers<[2], [2], [1], [1], [0, 0, 0, 1, 1, 1], [0], [0]>} : vector<1x24x32xbf16>, vector<1x24x32xbf16>, vector<1x24x24xf32> -> vector<1x24x24xf32>
    %cst_36 = arith.constant 0.176776692 : f32
    %109 = vector.broadcast %cst_36 : f32 to vector<1x24x24xf32>
    %110 = arith.mulf %108, %109 : vector<1x24x24xf32>
    %cst_37 = arith.constant -1.000000e+30 : f32
    %111 = vector.shape_cast %38 : vector<1x1x24xi1> to vector<1x1x24xi1>
    %112 = vector.broadcast %111 : vector<1x1x24xi1> to vector<1x24x24xi1>
    %113 = vector.broadcast %cst_37 : f32 to vector<1x24x24xf32>
    %114 = arith.select %112, %110, %113 : vector<1x24x24xi1>, vector<1x24x24xf32>
    %cst_38 = arith.constant dense<0xFF800000> : vector<1x24xf32>
    %115 = vector.multi_reduction <maximumf>, %114, %cst_38 [2] : vector<1x24x24xf32> to vector<1x24xf32>
    %116 = vector.shape_cast %115 : vector<1x24xf32> to vector<1x24x1xf32>
    %117 = vector.broadcast %116 : vector<1x24x1xf32> to vector<1x24x24xf32>
    %118 = arith.subf %114, %117 : vector<1x24x24xf32>
    %119 = math.exp %118 : vector<1x24x24xf32>
    %cst_39 = arith.constant dense<0.000000e+00> : vector<1x24xf32>
    %120 = vector.multi_reduction <add>, %119, %cst_39 [2] : vector<1x24x24xf32> to vector<1x24xf32>
    %121 = vector.shape_cast %120 : vector<1x24xf32> to vector<1x24x1xf32>
    %122 = tpu.reciprocal %121 {approx = true} : vector<1x24x1xf32> -> vector<1x24x1xf32>
    %123 = vector.broadcast %122 : vector<1x24x1xf32> to vector<1x24x24xf32>
    %124 = arith.mulf %119, %123 : vector<1x24x24xf32>
    %125 = arith.truncf %124 : vector<1x24x24xf32> to vector<1x24x24xbf16>
    %cst_40 = arith.constant dense<0.000000e+00> : vector<1x24x32xf32>
    %126 = tpu.matmul %125, %107, %cst_40 {dimension_numbers = #tpu.dot_dimension_numbers<[2], [1], [1], [2], [0, 0, 0, 1, 1, 2], [0], [0]>} : vector<1x24x24xbf16>, vector<1x24x32xbf16>, vector<1x24x32xf32> -> vector<1x24x32xf32>
    %127 = vector.shape_cast %126 : vector<1x24x32xf32> to vector<24x32xf32>
    %128 = arith.truncf %127 : vector<24x32xf32> to vector<24x32xbf16>
    %129 = vector.extract_strided_slice %40 {offsets = [64, 0], sizes = [32, 128], strides = [1, 1]} : vector<128x128xbf16> to vector<32x128xbf16>
    %cst_41 = arith.constant dense<0.000000e+00> : vector<24x128xf32>
    %130 = tpu.matmul %128, %129, %cst_41 {dimension_numbers = #tpu.dot_dimension_numbers<[1], [0], [0], [1], [0, 0, 1, 1], [], []>} : vector<24x32xbf16>, vector<32x128xbf16>, vector<24x128xf32> -> vector<24x128xf32>
    %131 = arith.addf %101, %130 : vector<24x128xf32>
    %132 = vector.extract_strided_slice %35 {offsets = [0, 0, 96], sizes = [1, 24, 32], strides = [1, 1, 1]} : vector<1x24x384xf32> to vector<1x24x32xf32>
    %133 = arith.truncf %132 : vector<1x24x32xf32> to vector<1x24x32xbf16>
    %134 = vector.extract_strided_slice %35 {offsets = [0, 0, 224], sizes = [1, 24, 32], strides = [1, 1, 1]} : vector<1x24x384xf32> to vector<1x24x32xf32>
    %135 = arith.truncf %134 : vector<1x24x32xf32> to vector<1x24x32xbf16>
    %136 = vector.extract_strided_slice %35 {offsets = [0, 0, 352], sizes = [1, 24, 32], strides = [1, 1, 1]} : vector<1x24x384xf32> to vector<1x24x32xf32>
    %137 = arith.truncf %136 : vector<1x24x32xf32> to vector<1x24x32xbf16>
    %cst_42 = arith.constant dense<0.000000e+00> : vector<1x24x24xf32>
    %138 = tpu.matmul %133, %135, %cst_42 {dimension_numbers = #tpu.dot_dimension_numbers<[2], [2], [1], [1], [0, 0, 0, 1, 1, 1], [0], [0]>} : vector<1x24x32xbf16>, vector<1x24x32xbf16>, vector<1x24x24xf32> -> vector<1x24x24xf32>
    %cst_43 = arith.constant 0.176776692 : f32
    %139 = vector.broadcast %cst_43 : f32 to vector<1x24x24xf32>
    %140 = arith.mulf %138, %139 : vector<1x24x24xf32>
    %cst_44 = arith.constant -1.000000e+30 : f32
    %141 = vector.shape_cast %38 : vector<1x1x24xi1> to vector<1x1x24xi1>
    %142 = vector.broadcast %141 : vector<1x1x24xi1> to vector<1x24x24xi1>
    %143 = vector.broadcast %cst_44 : f32 to vector<1x24x24xf32>
    %144 = arith.select %142, %140, %143 : vector<1x24x24xi1>, vector<1x24x24xf32>
    %cst_45 = arith.constant dense<0xFF800000> : vector<1x24xf32>
    %145 = vector.multi_reduction <maximumf>, %144, %cst_45 [2] : vector<1x24x24xf32> to vector<1x24xf32>
    %146 = vector.shape_cast %145 : vector<1x24xf32> to vector<1x24x1xf32>
    %147 = vector.broadcast %146 : vector<1x24x1xf32> to vector<1x24x24xf32>
    %148 = arith.subf %144, %147 : vector<1x24x24xf32>
    %149 = math.exp %148 : vector<1x24x24xf32>
    %cst_46 = arith.constant dense<0.000000e+00> : vector<1x24xf32>
    %150 = vector.multi_reduction <add>, %149, %cst_46 [2] : vector<1x24x24xf32> to vector<1x24xf32>
    %151 = vector.shape_cast %150 : vector<1x24xf32> to vector<1x24x1xf32>
    %152 = tpu.reciprocal %151 {approx = true} : vector<1x24x1xf32> -> vector<1x24x1xf32>
    %153 = vector.broadcast %152 : vector<1x24x1xf32> to vector<1x24x24xf32>
    %154 = arith.mulf %149, %153 : vector<1x24x24xf32>
    %155 = arith.truncf %154 : vector<1x24x24xf32> to vector<1x24x24xbf16>
    %cst_47 = arith.constant dense<0.000000e+00> : vector<1x24x32xf32>
    %156 = tpu.matmul %155, %137, %cst_47 {dimension_numbers = #tpu.dot_dimension_numbers<[2], [1], [1], [2], [0, 0, 0, 1, 1, 2], [0], [0]>} : vector<1x24x24xbf16>, vector<1x24x32xbf16>, vector<1x24x32xf32> -> vector<1x24x32xf32>
    %157 = vector.shape_cast %156 : vector<1x24x32xf32> to vector<24x32xf32>
    %158 = arith.truncf %157 : vector<24x32xf32> to vector<24x32xbf16>
    %159 = vector.extract_strided_slice %40 {offsets = [96, 0], sizes = [32, 128], strides = [1, 1]} : vector<128x128xbf16> to vector<32x128xbf16>
    %cst_48 = arith.constant dense<0.000000e+00> : vector<24x128xf32>
    %160 = tpu.matmul %158, %159, %cst_48 {dimension_numbers = #tpu.dot_dimension_numbers<[1], [0], [0], [1], [0, 0, 1, 1], [], []>} : vector<24x32xbf16>, vector<32x128xbf16>, vector<24x128xf32> -> vector<24x128xf32>
    %161 = arith.addf %131, %160 : vector<24x128xf32>
    %162 = arith.addf %4, %161 : vector<24x128xf32>
    %c0_49 = arith.constant 0 : index
    %c0_50 = arith.constant 0 : index
    %c0_51 = arith.constant 0 : index
    %163 = vector.load %arg7[%c0_49, %c0_50, %c0_51] : memref<1x1x128xf32, #tpu.memory_space<vmem>>, vector<1x1x128xf32>
    %164 = vector.shape_cast %163 : vector<1x1x128xf32> to vector<1x128xf32>
    %165 = vector.broadcast %164 : vector<1x128xf32> to vector<24x128xf32>
    %166 = arith.addf %162, %165 : vector<24x128xf32>
    %c0_52 = arith.constant 0 : index
    %c0_53 = arith.constant 0 : index
    %c0_54 = arith.constant 0 : index
    %167 = vector.load %arg8[%c0_52, %c0_53, %c0_54] : memref<1x1x128xf32, #tpu.memory_space<vmem>>, vector<1x1x128xf32>
    %168 = vector.shape_cast %167 : vector<1x1x128xf32> to vector<1x128xf32>
    %c0_55 = arith.constant 0 : index
    %c0_56 = arith.constant 0 : index
    %c0_57 = arith.constant 0 : index
    %169 = vector.load %arg9[%c0_55, %c0_56, %c0_57] : memref<1x1x128xf32, #tpu.memory_space<vmem>>, vector<1x1x128xf32>
    %170 = vector.shape_cast %169 : vector<1x1x128xf32> to vector<1x128xf32>
    %cst_58 = arith.constant dense<0.000000e+00> : vector<24xf32>
    %171 = vector.multi_reduction <add>, %166, %cst_58 [1] : vector<24x128xf32> to vector<24xf32>
    %172 = vector.shape_cast %171 : vector<24xf32> to vector<24x1xf32>
    %cst_59 = arith.constant 1.280000e+02 : f32
    %173 = vector.broadcast %cst_59 : f32 to vector<24x1xf32>
    %174 = arith.divf %172, %173 : vector<24x1xf32>
    %175 = vector.broadcast %174 : vector<24x1xf32> to vector<24x128xf32>
    %176 = arith.subf %166, %175 : vector<24x128xf32>
    %177 = arith.mulf %176, %176 : vector<24x128xf32>
    %cst_60 = arith.constant dense<0.000000e+00> : vector<24xf32>
    %178 = vector.multi_reduction <add>, %177, %cst_60 [1] : vector<24x128xf32> to vector<24xf32>
    %179 = vector.shape_cast %178 : vector<24xf32> to vector<24x1xf32>
    %cst_61 = arith.constant 1.280000e+02 : f32
    %180 = vector.broadcast %cst_61 : f32 to vector<24x1xf32>
    %181 = arith.divf %179, %180 : vector<24x1xf32>
    %182 = vector.broadcast %174 : vector<24x1xf32> to vector<24x128xf32>
    %183 = arith.subf %166, %182 : vector<24x128xf32>
    %cst_62 = arith.constant 9.99999974E-6 : f32
    %184 = vector.broadcast %cst_62 : f32 to vector<24x1xf32>
    %185 = arith.addf %181, %184 : vector<24x1xf32>
    %186 = math.rsqrt %185 : vector<24x1xf32>
    %187 = vector.broadcast %186 : vector<24x1xf32> to vector<24x128xf32>
    %188 = arith.mulf %183, %187 : vector<24x128xf32>
    %189 = vector.broadcast %168 : vector<1x128xf32> to vector<24x128xf32>
    %190 = arith.mulf %188, %189 : vector<24x128xf32>
    %191 = vector.broadcast %170 : vector<1x128xf32> to vector<24x128xf32>
    %192 = arith.addf %190, %191 : vector<24x128xf32>
    %193 = arith.truncf %192 : vector<24x128xf32> to vector<24x128xbf16>
    %c0_63 = arith.constant 0 : index
    %c0_64 = arith.constant 0 : index
    %c0_65 = arith.constant 0 : index
    %194 = vector.load %arg10[%c0_63, %c0_64, %c0_65] : memref<1x128x256xbf16, #tpu.memory_space<vmem>>, vector<1x128x256xbf16>
    %195 = vector.shape_cast %194 : vector<1x128x256xbf16> to vector<128x256xbf16>
    %cst_66 = arith.constant dense<0.000000e+00> : vector<24x256xf32>
    %196 = tpu.matmul %193, %195, %cst_66 {dimension_numbers = #tpu.dot_dimension_numbers<[1], [0], [0], [1], [0, 0, 1, 1], [], []>} : vector<24x128xbf16>, vector<128x256xbf16>, vector<24x256xf32> -> vector<24x256xf32>
    %c0_67 = arith.constant 0 : index
    %c0_68 = arith.constant 0 : index
    %c0_69 = arith.constant 0 : index
    %197 = vector.load %arg11[%c0_67, %c0_68, %c0_69] : memref<1x1x256xf32, #tpu.memory_space<vmem>>, vector<1x1x256xf32>
    %198 = vector.shape_cast %197 : vector<1x1x256xf32> to vector<1x256xf32>
    %199 = vector.broadcast %198 : vector<1x256xf32> to vector<24x256xf32>
    %200 = arith.addf %196, %199 : vector<24x256xf32>
    %cst_70 = arith.constant 5.000000e-01 : f32
    %201 = vector.broadcast %cst_70 : f32 to vector<24x256xf32>
    %202 = arith.mulf %201, %200 : vector<24x256xf32>
    %cst_71 = arith.constant 4.471500e-02 : f32
    %203 = vector.broadcast %cst_71 : f32 to vector<24x256xf32>
    %204 = arith.mulf %203, %200 : vector<24x256xf32>
    %205 = arith.mulf %204, %200 : vector<24x256xf32>
    %206 = arith.mulf %205, %200 : vector<24x256xf32>
    %207 = arith.addf %200, %206 : vector<24x256xf32>
    %cst_72 = arith.constant 0.797884583 : f32
    %208 = vector.broadcast %cst_72 : f32 to vector<24x256xf32>
    %209 = arith.mulf %208, %207 : vector<24x256xf32>
    %210 = math.tanh %209 : vector<24x256xf32>
    %cst_73 = arith.constant 1.000000e+00 : f32
    %211 = vector.broadcast %cst_73 : f32 to vector<24x256xf32>
    %212 = arith.addf %211, %210 : vector<24x256xf32>
    %213 = arith.mulf %202, %212 : vector<24x256xf32>
    %214 = arith.truncf %213 : vector<24x256xf32> to vector<24x256xbf16>
    %c0_74 = arith.constant 0 : index
    %c0_75 = arith.constant 0 : index
    %c0_76 = arith.constant 0 : index
    %215 = vector.load %arg12[%c0_74, %c0_75, %c0_76] : memref<1x256x128xbf16, #tpu.memory_space<vmem>>, vector<1x256x128xbf16>
    %216 = vector.shape_cast %215 : vector<1x256x128xbf16> to vector<256x128xbf16>
    %cst_77 = arith.constant dense<0.000000e+00> : vector<24x128xf32>
    %217 = tpu.matmul %214, %216, %cst_77 {dimension_numbers = #tpu.dot_dimension_numbers<[1], [0], [0], [1], [0, 0, 1, 1], [], []>} : vector<24x256xbf16>, vector<256x128xbf16>, vector<24x128xf32> -> vector<24x128xf32>
    %218 = arith.addf %166, %217 : vector<24x128xf32>
    %c0_78 = arith.constant 0 : index
    %c0_79 = arith.constant 0 : index
    %c0_80 = arith.constant 0 : index
    %219 = vector.load %arg13[%c0_78, %c0_79, %c0_80] : memref<1x1x128xf32, #tpu.memory_space<vmem>>, vector<1x1x128xf32>
    %220 = vector.shape_cast %219 : vector<1x1x128xf32> to vector<1x128xf32>
    %221 = vector.broadcast %220 : vector<1x128xf32> to vector<24x128xf32>
    %222 = arith.addf %218, %221 : vector<24x128xf32>
    %223 = vector.shape_cast %222 : vector<24x128xf32> to vector<1x24x128xf32>
    %c0_81 = arith.constant 0 : index
    %c0_82 = arith.constant 0 : index
    %c0_83 = arith.constant 0 : index
    %224 = vector.load %arg19[%c0_81, %c0_82, %c0_83] : memref<1x24x128xf32, #tpu.memory_space<vmem>>, vector<1x24x128xf32>
    tpu.vector_store %arg19[%c0_81, %c0_82, %c0_83], %223 {strides = array<i32>} : memref<1x24x128xf32, #tpu.memory_space<vmem>>, vector<1x24x128xf32>,
    %c1_i32 = arith.constant 1 : i32
    %225 = arith.cmpi eq, %arg1, %c1_i32 : i32
    %226 = arith.extui %225 : i1 to i32
    %c0_i32_84 = arith.constant 0 : i32
    %227 = arith.cmpi ne, %226, %c0_i32_84 : i32
    scf.if %227 {
      %228 = vector.extract_strided_slice %222 {offsets = [0, 0], sizes = [1, 128], strides = [1, 1]} : vector<24x128xf32> to vector<1x128xf32>
      %c0_85 = arith.constant 0 : index
      %c0_86 = arith.constant 0 : index
      %229 = vector.load %arg14[%c0_85, %c0_86] : memref<1x128xf32, #tpu.memory_space<vmem>>, vector<1x128xf32>
      %c0_87 = arith.constant 0 : index
      %c0_88 = arith.constant 0 : index
      %230 = vector.load %arg15[%c0_87, %c0_88] : memref<1x128xf32, #tpu.memory_space<vmem>>, vector<1x128xf32>
      %cst_89 = arith.constant dense<0.000000e+00> : vector<1xf32>
      %231 = vector.multi_reduction <add>, %228, %cst_89 [1] : vector<1x128xf32> to vector<1xf32>
      %232 = vector.shape_cast %231 : vector<1xf32> to vector<1x1xf32>
      %cst_90 = arith.constant 1.280000e+02 : f32
      %233 = vector.broadcast %cst_90 : f32 to vector<1x1xf32>
      %234 = arith.divf %232, %233 : vector<1x1xf32>
      %235 = vector.broadcast %234 : vector<1x1xf32> to vector<1x128xf32>
      %236 = arith.subf %228, %235 : vector<1x128xf32>
      %237 = arith.mulf %236, %236 : vector<1x128xf32>
      %cst_91 = arith.constant dense<0.000000e+00> : vector<1xf32>
      %238 = vector.multi_reduction <add>, %237, %cst_91 [1] : vector<1x128xf32> to vector<1xf32>
      %239 = vector.shape_cast %238 : vector<1xf32> to vector<1x1xf32>
      %cst_92 = arith.constant 1.280000e+02 : f32
      %240 = vector.broadcast %cst_92 : f32 to vector<1x1xf32>
      %241 = arith.divf %239, %240 : vector<1x1xf32>
      %242 = vector.broadcast %234 : vector<1x1xf32> to vector<1x128xf32>
      %243 = arith.subf %228, %242 : vector<1x128xf32>
      %cst_93 = arith.constant 9.99999974E-6 : f32
      %244 = vector.broadcast %cst_93 : f32 to vector<1x1xf32>
      %245 = arith.addf %241, %244 : vector<1x1xf32>
      %246 = math.rsqrt %245 : vector<1x1xf32>
      %247 = vector.broadcast %246 : vector<1x1xf32> to vector<1x128xf32>
      %248 = arith.mulf %243, %247 : vector<1x128xf32>
      %249 = arith.mulf %248, %229 : vector<1x128xf32>
      %250 = arith.addf %249, %230 : vector<1x128xf32>
      %251 = arith.truncf %250 : vector<1x128xf32> to vector<1x128xbf16>
      %c0_94 = arith.constant 0 : index
      %c0_95 = arith.constant 0 : index
      %252 = vector.load %arg16[%c0_94, %c0_95] : memref<128x128xbf16, #tpu.memory_space<vmem>>, vector<128x128xbf16>
      %cst_96 = arith.constant dense<0.000000e+00> : vector<1x128xf32>
      %253 = tpu.matmul %251, %252, %cst_96 {dimension_numbers = #tpu.dot_dimension_numbers<[1], [0], [0], [1], [0, 0, 1, 1], [], []>} : vector<1x128xbf16>, vector<128x128xbf16>, vector<1x128xf32> -> vector<1x128xf32>
      %c0_97 = arith.constant 0 : index
      %c0_98 = arith.constant 0 : index
      %254 = vector.load %arg17[%c0_97, %c0_98] : memref<1x128xf32, #tpu.memory_space<vmem>>, vector<1x128xf32>
      %255 = arith.addf %253, %254 : vector<1x128xf32>
      %c0_99 = arith.constant 0 : index
      %c0_100 = arith.constant 0 : index
      %c0_101 = arith.constant 0 : index
      %256 = vector.load %arg18[%c0_99, %c0_100, %c0_101] : memref<1x1x128xf32, #tpu.memory_space<vmem>>, vector<1x1x128xf32>
      %257 = vector.shape_cast %256 : vector<1x1x128xf32> to vector<1x128xf32>
      %258 = vector.shape_cast %255 : vector<1x128xf32> to vector<1x1x128xf32>
      tpu.vector_store %arg18[%c0_99, %c0_100, %c0_101], %258 {strides = array<i32>} : memref<1x1x128xf32, #tpu.memory_space<vmem>>, vector<1x1x128xf32>,
    } else {
    }
    return
  }
  func.func @transform_0(%arg0: i32, %arg1: i32) -> (i32, i32, i32) {
    %c0_i32 = arith.constant 0 : i32
    %c0_i32_0 = arith.constant 0 : i32
    %c0_i32_1 = arith.constant 0 : i32
    return %arg0, %c0_i32, %c0_i32_0 : i32, i32, i32
  }
  func.func @transform_1(%arg0: i32, %arg1: i32) -> (i32, i32, i32) {
    %c0_i32 = arith.constant 0 : i32
    %c0_i32_0 = arith.constant 0 : i32
    %c0_i32_1 = arith.constant 0 : i32
    return %arg1, %c0_i32, %c0_i32_0 : i32, i32, i32
  }
  func.func @transform_2(%arg0: i32, %arg1: i32) -> (i32, i32, i32) {
    %c0_i32 = arith.constant 0 : i32
    %c0_i32_0 = arith.constant 0 : i32
    %c0_i32_1 = arith.constant 0 : i32
    return %arg1, %c0_i32, %c0_i32_0 : i32, i32, i32
  }
  func.func @transform_3(%arg0: i32, %arg1: i32) -> (i32, i32, i32) {
    %c0_i32 = arith.constant 0 : i32
    %c0_i32_0 = arith.constant 0 : i32
    %c0_i32_1 = arith.constant 0 : i32
    return %arg1, %c0_i32, %c0_i32_0 : i32, i32, i32
  }
  func.func @transform_4(%arg0: i32, %arg1: i32) -> (i32, i32, i32) {
    %c0_i32 = arith.constant 0 : i32
    %c0_i32_0 = arith.constant 0 : i32
    %c0_i32_1 = arith.constant 0 : i32
    return %arg1, %c0_i32, %c0_i32_0 : i32, i32, i32
  }
  func.func @transform_5(%arg0: i32, %arg1: i32) -> (i32, i32, i32) {
    %c0_i32 = arith.constant 0 : i32
    %c0_i32_0 = arith.constant 0 : i32
    %c0_i32_1 = arith.constant 0 : i32
    return %arg1, %c0_i32, %c0_i32_0 : i32, i32, i32
  }
  func.func @transform_6(%arg0: i32, %arg1: i32) -> (i32, i32, i32) {
    %c0_i32 = arith.constant 0 : i32
    %c0_i32_0 = arith.constant 0 : i32
    %c0_i32_1 = arith.constant 0 : i32
    return %arg1, %c0_i32, %c0_i32_0 : i32, i32, i32
  }
  func.func @transform_7(%arg0: i32, %arg1: i32) -> (i32, i32, i32) {
    %c0_i32 = arith.constant 0 : i32
    %c0_i32_0 = arith.constant 0 : i32
    %c0_i32_1 = arith.constant 0 : i32
    return %arg1, %c0_i32, %c0_i32_0 : i32, i32, i32
  }
  func.func @transform_8(%arg0: i32, %arg1: i32) -> (i32, i32, i32) {
    %c0_i32 = arith.constant 0 : i32
    %c0_i32_0 = arith.constant 0 : i32
    %c0_i32_1 = arith.constant 0 : i32
    return %arg1, %c0_i32, %c0_i32_0 : i32, i32, i32
  }
  func.func @transform_9(%arg0: i32, %arg1: i32) -> (i32, i32, i32) {
    %c0_i32 = arith.constant 0 : i32
    %c0_i32_0 = arith.constant 0 : i32
    %c0_i32_1 = arith.constant 0 : i32
    return %arg1, %c0_i32, %c0_i32_0 : i32, i32, i32
  }
  func.func @transform_10(%arg0: i32, %arg1: i32) -> (i32, i32, i32) {
    %c0_i32 = arith.constant 0 : i32
    %c0_i32_0 = arith.constant 0 : i32
    %c0_i32_1 = arith.constant 0 : i32
    return %arg1, %c0_i32, %c0_i32_0 : i32, i32, i32
  }
  func.func @transform_11(%arg0: i32, %arg1: i32) -> (i32, i32, i32) {
    %c0_i32 = arith.constant 0 : i32
    %c0_i32_0 = arith.constant 0 : i32
    %c0_i32_1 = arith.constant 0 : i32
    return %arg1, %c0_i32, %c0_i32_0 : i32, i32, i32
  }
  func.func @transform_12(%arg0: i32, %arg1: i32) -> (i32, i32) {
    %c0_i32 = arith.constant 0 : i32
    %c0_i32_0 = arith.constant 0 : i32
    %c0_i32_1 = arith.constant 0 : i32
    return %c0_i32, %c0_i32_0 : i32, i32
  }
  func.func @transform_13(%arg0: i32, %arg1: i32) -> (i32, i32) {
    %c0_i32 = arith.constant 0 : i32
    %c0_i32_0 = arith.constant 0 : i32
    %c0_i32_1 = arith.constant 0 : i32
    return %c0_i32, %c0_i32_0 : i32, i32
  }
  func.func @transform_14(%arg0: i32, %arg1: i32) -> (i32, i32) {
    %c0_i32 = arith.constant 0 : i32
    %c0_i32_0 = arith.constant 0 : i32
    %c0_i32_1 = arith.constant 0 : i32
    return %c0_i32, %c0_i32_0 : i32, i32
  }
  func.func @transform_15(%arg0: i32, %arg1: i32) -> (i32, i32) {
    %c0_i32 = arith.constant 0 : i32
    %c0_i32_0 = arith.constant 0 : i32
    %c0_i32_1 = arith.constant 0 : i32
    return %c0_i32, %c0_i32_0 : i32, i32
  }
  func.func @transform_16(%arg0: i32, %arg1: i32) -> (i32, i32, i32) {
    %c0_i32 = arith.constant 0 : i32
    %c0_i32_0 = arith.constant 0 : i32
    %c0_i32_1 = arith.constant 0 : i32
    return %arg0, %c0_i32, %c0_i32_0 : i32, i32, i32
  }
}

module attributes {stable_mosaic.version = 11 : i64} {
  func.func @_patch_embed_kernel(%arg0: i32, %arg1: memref<1x16x192xbf16, #tpu.memory_space<vmem>>, %arg2: memref<1x192xf32, #tpu.memory_space<vmem>>, %arg3: memref<1x192xf32, #tpu.memory_space<vmem>>, %arg4: memref<192x128xbf16, #tpu.memory_space<vmem>>, %arg5: memref<1x128xf32, #tpu.memory_space<vmem>>, %arg6: memref<1x128xf32, #tpu.memory_space<vmem>>, %arg7: memref<1x128xf32, #tpu.memory_space<vmem>>, %arg8: memref<1x1x128xf32, #tpu.memory_space<vmem>>, %arg9: memref<1x24x128xf32, #tpu.memory_space<vmem>>, %arg10: memref<1x24x128xf32, #tpu.memory_space<vmem>>) attributes {dimension_semantics = [#tpu.dimension_semantics<parallel>], iteration_bounds = array<i64: 2>, scalar_prefetch = 0 : i64, scratch_operands = 0 : i64, tpu.core_type = #tpu.core_type<tc>, window_params = [{transform_indices = @transform_0, window_bounds = array<i64: 1, 16, 192>}, {pipeline_mode = #tpu.pipeline_mode<synchronous>, transform_indices = @transform_1, window_bounds = array<i64: 1, 192>}, {pipeline_mode = #tpu.pipeline_mode<synchronous>, transform_indices = @transform_2, window_bounds = array<i64: 1, 192>}, {pipeline_mode = #tpu.pipeline_mode<synchronous>, transform_indices = @transform_3, window_bounds = array<i64: 192, 128>}, {pipeline_mode = #tpu.pipeline_mode<synchronous>, transform_indices = @transform_4, window_bounds = array<i64: 1, 128>}, {pipeline_mode = #tpu.pipeline_mode<synchronous>, transform_indices = @transform_5, window_bounds = array<i64: 1, 128>}, {pipeline_mode = #tpu.pipeline_mode<synchronous>, transform_indices = @transform_6, window_bounds = array<i64: 1, 128>}, {pipeline_mode = #tpu.pipeline_mode<synchronous>, transform_indices = @transform_7, window_bounds = array<i64: 1, 1, 128>}, {pipeline_mode = #tpu.pipeline_mode<synchronous>, transform_indices = @transform_8, window_bounds = array<i64: 1, 24, 128>}, {transform_indices = @transform_9, window_bounds = array<i64: 1, 24, 128>}]} {
    %c0 = arith.constant 0 : index
    %c0_0 = arith.constant 0 : index
    %c0_1 = arith.constant 0 : index
    %0 = vector.load %arg1[%c0, %c0_0, %c0_1] : memref<1x16x192xbf16, #tpu.memory_space<vmem>>, vector<1x16x192xbf16>
    %1 = vector.shape_cast %0 : vector<1x16x192xbf16> to vector<16x192xbf16>
    %2 = arith.extf %1 : vector<16x192xbf16> to vector<16x192xf32>
    %c0_2 = arith.constant 0 : index
    %c0_3 = arith.constant 0 : index
    %3 = vector.load %arg2[%c0_2, %c0_3] : memref<1x192xf32, #tpu.memory_space<vmem>>, vector<1x192xf32>
    %c0_4 = arith.constant 0 : index
    %c0_5 = arith.constant 0 : index
    %4 = vector.load %arg3[%c0_4, %c0_5] : memref<1x192xf32, #tpu.memory_space<vmem>>, vector<1x192xf32>
    %cst = arith.constant dense<0.000000e+00> : vector<16xf32>
    %5 = vector.multi_reduction <add>, %2, %cst [1] : vector<16x192xf32> to vector<16xf32>
    %6 = vector.shape_cast %5 : vector<16xf32> to vector<16x1xf32>
    %cst_6 = arith.constant 1.920000e+02 : f32
    %7 = vector.broadcast %cst_6 : f32 to vector<16x1xf32>
    %8 = arith.divf %6, %7 : vector<16x1xf32>
    %9 = vector.broadcast %8 : vector<16x1xf32> to vector<16x192xf32>
    %10 = arith.subf %2, %9 : vector<16x192xf32>
    %11 = arith.mulf %10, %10 : vector<16x192xf32>
    %cst_7 = arith.constant dense<0.000000e+00> : vector<16xf32>
    %12 = vector.multi_reduction <add>, %11, %cst_7 [1] : vector<16x192xf32> to vector<16xf32>
    %13 = vector.shape_cast %12 : vector<16xf32> to vector<16x1xf32>
    %cst_8 = arith.constant 1.920000e+02 : f32
    %14 = vector.broadcast %cst_8 : f32 to vector<16x1xf32>
    %15 = arith.divf %13, %14 : vector<16x1xf32>
    %16 = vector.broadcast %8 : vector<16x1xf32> to vector<16x192xf32>
    %17 = arith.subf %2, %16 : vector<16x192xf32>
    %cst_9 = arith.constant 9.99999974E-6 : f32
    %18 = vector.broadcast %cst_9 : f32 to vector<16x1xf32>
    %19 = arith.addf %15, %18 : vector<16x1xf32>
    %20 = math.rsqrt %19 : vector<16x1xf32>
    %21 = vector.broadcast %20 : vector<16x1xf32> to vector<16x192xf32>
    %22 = arith.mulf %17, %21 : vector<16x192xf32>
    %23 = vector.broadcast %3 : vector<1x192xf32> to vector<16x192xf32>
    %24 = arith.mulf %22, %23 : vector<16x192xf32>
    %25 = vector.broadcast %4 : vector<1x192xf32> to vector<16x192xf32>
    %26 = arith.addf %24, %25 : vector<16x192xf32>
    %27 = arith.truncf %26 : vector<16x192xf32> to vector<16x192xbf16>
    %c0_10 = arith.constant 0 : index
    %c0_11 = arith.constant 0 : index
    %28 = vector.load %arg4[%c0_10, %c0_11] : memref<192x128xbf16, #tpu.memory_space<vmem>>, vector<192x128xbf16>
    %cst_12 = arith.constant dense<0.000000e+00> : vector<16x128xf32>
    %29 = tpu.matmul %27, %28, %cst_12 {dimension_numbers = #tpu.dot_dimension_numbers<[1], [0], [0], [1], [0, 0, 1, 1], [], []>} : vector<16x192xbf16>, vector<192x128xbf16>, vector<16x128xf32> -> vector<16x128xf32>
    %c0_13 = arith.constant 0 : index
    %c0_14 = arith.constant 0 : index
    %30 = vector.load %arg5[%c0_13, %c0_14] : memref<1x128xf32, #tpu.memory_space<vmem>>, vector<1x128xf32>
    %31 = vector.broadcast %30 : vector<1x128xf32> to vector<16x128xf32>
    %32 = arith.addf %29, %31 : vector<16x128xf32>
    %c0_15 = arith.constant 0 : index
    %c0_16 = arith.constant 0 : index
    %33 = vector.load %arg6[%c0_15, %c0_16] : memref<1x128xf32, #tpu.memory_space<vmem>>, vector<1x128xf32>
    %c0_17 = arith.constant 0 : index
    %c0_18 = arith.constant 0 : index
    %34 = vector.load %arg7[%c0_17, %c0_18] : memref<1x128xf32, #tpu.memory_space<vmem>>, vector<1x128xf32>
    %cst_19 = arith.constant dense<0.000000e+00> : vector<16xf32>
    %35 = vector.multi_reduction <add>, %32, %cst_19 [1] : vector<16x128xf32> to vector<16xf32>
    %36 = vector.shape_cast %35 : vector<16xf32> to vector<16x1xf32>
    %cst_20 = arith.constant 1.280000e+02 : f32
    %37 = vector.broadcast %cst_20 : f32 to vector<16x1xf32>
    %38 = arith.divf %36, %37 : vector<16x1xf32>
    %39 = vector.broadcast %38 : vector<16x1xf32> to vector<16x128xf32>
    %40 = arith.subf %32, %39 : vector<16x128xf32>
    %41 = arith.mulf %40, %40 : vector<16x128xf32>
    %cst_21 = arith.constant dense<0.000000e+00> : vector<16xf32>
    %42 = vector.multi_reduction <add>, %41, %cst_21 [1] : vector<16x128xf32> to vector<16xf32>
    %43 = vector.shape_cast %42 : vector<16xf32> to vector<16x1xf32>
    %cst_22 = arith.constant 1.280000e+02 : f32
    %44 = vector.broadcast %cst_22 : f32 to vector<16x1xf32>
    %45 = arith.divf %43, %44 : vector<16x1xf32>
    %46 = vector.broadcast %38 : vector<16x1xf32> to vector<16x128xf32>
    %47 = arith.subf %32, %46 : vector<16x128xf32>
    %cst_23 = arith.constant 9.99999974E-6 : f32
    %48 = vector.broadcast %cst_23 : f32 to vector<16x1xf32>
    %49 = arith.addf %45, %48 : vector<16x1xf32>
    %50 = math.rsqrt %49 : vector<16x1xf32>
    %51 = vector.broadcast %50 : vector<16x1xf32> to vector<16x128xf32>
    %52 = arith.mulf %47, %51 : vector<16x128xf32>
    %53 = vector.broadcast %33 : vector<1x128xf32> to vector<16x128xf32>
    %54 = arith.mulf %52, %53 : vector<16x128xf32>
    %55 = vector.broadcast %34 : vector<1x128xf32> to vector<16x128xf32>
    %56 = arith.addf %54, %55 : vector<16x128xf32>
    %c0_24 = arith.constant 0 : index
    %c0_25 = arith.constant 0 : index
    %c0_26 = arith.constant 0 : index
    %57 = vector.load %arg8[%c0_24, %c0_25, %c0_26] : memref<1x1x128xf32, #tpu.memory_space<vmem>>, vector<1x1x128xf32>
    %58 = vector.shape_cast %57 : vector<1x1x128xf32> to vector<1x128xf32>
    %cst_27 = arith.constant 0.000000e+00 : f32
    %59 = vector.broadcast %cst_27 : f32 to vector<7x128xf32>
    %60 = tpu.concatenate %58, %56, %59 in 0 : vector<1x128xf32>, vector<16x128xf32>, vector<7x128xf32> -> vector<24x128xf32>
    %c0_28 = arith.constant 0 : index
    %c0_29 = arith.constant 0 : index
    %c0_30 = arith.constant 0 : index
    %61 = vector.load %arg9[%c0_28, %c0_29, %c0_30] : memref<1x24x128xf32, #tpu.memory_space<vmem>>, vector<1x24x128xf32>
    %62 = vector.shape_cast %61 : vector<1x24x128xf32> to vector<24x128xf32>
    %63 = arith.addf %60, %62 : vector<24x128xf32>
    %c0_31 = arith.constant 0 : index
    %c0_32 = arith.constant 0 : index
    %c0_33 = arith.constant 0 : index
    %64 = vector.load %arg10[%c0_31, %c0_32, %c0_33] : memref<1x24x128xf32, #tpu.memory_space<vmem>>, vector<1x24x128xf32>
    %65 = vector.shape_cast %64 : vector<1x24x128xf32> to vector<24x128xf32>
    %66 = vector.shape_cast %63 : vector<24x128xf32> to vector<1x24x128xf32>
    tpu.vector_store %arg10[%c0_31, %c0_32, %c0_33], %66 {strides = array<i32>} : memref<1x24x128xf32, #tpu.memory_space<vmem>>, vector<1x24x128xf32>,
    return
  }
  func.func @transform_0(%arg0: i32) -> (i32, i32, i32) {
    %c0_i32 = arith.constant 0 : i32
    %c0_i32_0 = arith.constant 0 : i32
    %c0_i32_1 = arith.constant 0 : i32
    return %arg0, %c0_i32, %c0_i32_0 : i32, i32, i32
  }
  func.func @transform_1(%arg0: i32) -> (i32, i32) {
    %c0_i32 = arith.constant 0 : i32
    %c0_i32_0 = arith.constant 0 : i32
    %c0_i32_1 = arith.constant 0 : i32
    return %c0_i32, %c0_i32_0 : i32, i32
  }
  func.func @transform_2(%arg0: i32) -> (i32, i32) {
    %c0_i32 = arith.constant 0 : i32
    %c0_i32_0 = arith.constant 0 : i32
    %c0_i32_1 = arith.constant 0 : i32
    return %c0_i32, %c0_i32_0 : i32, i32
  }
  func.func @transform_3(%arg0: i32) -> (i32, i32) {
    %c0_i32 = arith.constant 0 : i32
    %c0_i32_0 = arith.constant 0 : i32
    %c0_i32_1 = arith.constant 0 : i32
    return %c0_i32, %c0_i32_0 : i32, i32
  }
  func.func @transform_4(%arg0: i32) -> (i32, i32) {
    %c0_i32 = arith.constant 0 : i32
    %c0_i32_0 = arith.constant 0 : i32
    %c0_i32_1 = arith.constant 0 : i32
    return %c0_i32, %c0_i32_0 : i32, i32
  }
  func.func @transform_5(%arg0: i32) -> (i32, i32) {
    %c0_i32 = arith.constant 0 : i32
    %c0_i32_0 = arith.constant 0 : i32
    %c0_i32_1 = arith.constant 0 : i32
    return %c0_i32, %c0_i32_0 : i32, i32
  }
  func.func @transform_6(%arg0: i32) -> (i32, i32) {
    %c0_i32 = arith.constant 0 : i32
    %c0_i32_0 = arith.constant 0 : i32
    %c0_i32_1 = arith.constant 0 : i32
    return %c0_i32, %c0_i32_0 : i32, i32
  }
  func.func @transform_7(%arg0: i32) -> (i32, i32, i32) {
    %c0_i32 = arith.constant 0 : i32
    %c0_i32_0 = arith.constant 0 : i32
    %c0_i32_1 = arith.constant 0 : i32
    %c0_i32_2 = arith.constant 0 : i32
    return %c0_i32, %c0_i32_0, %c0_i32_1 : i32, i32, i32
  }
  func.func @transform_8(%arg0: i32) -> (i32, i32, i32) {
    %c0_i32 = arith.constant 0 : i32
    %c0_i32_0 = arith.constant 0 : i32
    %c0_i32_1 = arith.constant 0 : i32
    %c0_i32_2 = arith.constant 0 : i32
    return %c0_i32, %c0_i32_0, %c0_i32_1 : i32, i32, i32
  }
  func.func @transform_9(%arg0: i32) -> (i32, i32, i32) {
    %c0_i32 = arith.constant 0 : i32
    %c0_i32_0 = arith.constant 0 : i32
    %c0_i32_1 = arith.constant 0 : i32
    return %arg0, %c0_i32, %c0_i32_0 : i32, i32, i32
  }
}

</mosaic_0001>

<bundles_post_ra>
// kernel: _lambda_.4
= control target key start
LH: loop header
LB: loop body
LE: loop exit
PB: predicated region body
PF: predicated region fallthrough
CT: control target
= control target key end

     0   :  { %s792_s30 = smov 0   ;;  %s881_s0 = inlined_call_operand.vmem [shape: bf16[2,16,192], index: 0, kind: input, shape index: {}]   ;;  %s882_s1 = inlined_call_operand.vmem [shape: f32[1,192], index: 1, kind: input, shape index: {}]   ;;  %s883_s2 = inlined_call_operand.vmem [shape: f32[1,192], index: 2, kind: input, shape index: {}]   ;;  %s884_s3 = inlined_call_operand.vmem [shape: bf16[192,128], index: 3, kind: input, shape index: {}]   ;;  %s885_s4 = inlined_call_operand.vmem [shape: f32[1,128], index: 4, kind: input, shape index: {}]   ;;  %s886_s5 = inlined_call_operand.vmem [shape: f32[1,128], index: 5, kind: input, shape index: {}]   ;;  %s887_s6 = inlined_call_operand.vmem [shape: f32[1,128], index: 6, kind: input, shape index: {}]   ;;  %s888_s7 = inlined_call_operand.vmem [shape: f32[1,1,128], index: 7, kind: input, shape index: {}]   ;;  %s889_s8 = inlined_call_operand.vmem [shape: f32[1,24,128], index: 8, kind: input, shape index: {}]   ;;  %s890_s9 = inlined_call_operand.vmem [shape: f32[2,24,128], index: 9, kind: output, shape index: {}]  }
   0x1 LB: > { %s676_s10 = sadd.s32 4294967295, %s739_s30   ;;  %p680_p0 = scmp.ge.s32.totalorder %s739_s30, 1  ;;  %s739_s30 = sphi %s792_s30, %s19_s30  }
   0x2   : > { %p287_p1 = scmp.lt.s32.totalorder %s739_s30, 3 }
   0x4   : > { %p288_p2 = pnand %p680_p0, %p287_p1 }
   0x5   : > { %p323_p3 = scmp.lt.s32.totalorder (!%p288_p2), %s676_s10, 1 }
   0x6   : > { %291 = sbr.rel (%p288_p2) target bundleno = 847 (0x34f), region = 56 }
   0xb   : > { %s892_s10 = smov (!%p323_p3, %s676_s10), 1  ;;  %vm342_vm0 = vcmask 523264   ;;  %v713_v10 = vld [vmem:[%s884_s3 + $0x38] sm:$0xff]   ;;  %v741_v11 = vmov 0   ;;  %v714_v12 = vld [vmem:[%s884_s3 + $0x30] sm:$0xff]   ;;  %v715_v13 = vld [vmem:[%s884_s3 + $0x28] sm:$0xff]   ;;  %v381_v45 = vlaneseq }
   0xc   : > { %s702_s11 = sshll.u32 %s892_s10, 4  ;;  %518 = vmatprep.subr.bf16.mxu0 %v741_v11  ;;  %v716_v14 = vld [vmem:[%s884_s3 + $0x20] sm:$0xff]   ;;  %v717_v31 = vld [vmem:[%s884_s3 + $0x18] sm:$0xff]   ;;  %v718_v32 = vld [vmem:[%s884_s3 + $0x10] sm:$0xff]   ;;  %vm603_vm1 = vcmask 1040384  }
   0xd   : > { %s327_s14 = scalar_lea.vmem %s881_s0, %s702_s11  ;;  %519 = vmatpush1.bf16.msra.mxu0 %v713_v10  ;;  %v719_v33 = vld [vmem:[%s884_s3 + $0x8] sm:$0xff]   ;;  %v720_v34 = vld [vmem:[%s884_s3] sm:$0xff]   ;;  %v721_v35 = vld [vmem:[%s884_s3 + $0x58] sm:$0xff]   ;;  %v382_v46 = vshrl.u32 %v381_v45, 7  ;;  %s703_s11 = smul.u32 24, %s892_s10 }
   0xe   : > { %v334_v0 = vld [vmem:[%s327_s14] sm:$0xff]  ;;  %v335_v1 = vld [vmem:[%s327_s14 + $0x8] sm:$0xff]  ;;  %520 = vmatprep.subr.bf16.mxu0 %v741_v11  ;;  %v722_v36 = vld [vmem:[%s884_s3 + $0x50] sm:$0xff]  }
   0xf   : > { %v336_v2 = vunpack.c.l.bf16 %v334_v0  ;;  %v337_v3 = vunpack.c.h.bf16 %v334_v0  ;;  %v339_v4 = vunpack.c.h.bf16 %v335_v1  ;;  %v338_v5 = vunpack.c.l.bf16 %v335_v1  ;;  %v723_v37 = vld [vmem:[%s884_s3 + $0x48] sm:$0xff]   ;;  %v724_v38 = vld [vmem:[%s884_s3 + $0x40] sm:$0xff]   ;;  %s332_s18 = scalar_lea.vmem %s890_s9, %s703_s11 }
  0x10   : > { %v383_v47 = vsub.s32 0, %v382_v46  ;;  %v387_v48 = vsub.s32 1, %v382_v46  ;;  %v340_v49 = vld [vmem:[%s882_s1] sm:$0x3] }
  0x11   : > { %v343_v6 = vsel %vm342_vm0, %v337_v3, 0.0  ;;  %v347_v7 = vsel %vm342_vm0, %v339_v4, 0.0  ;;  %521 = vmatpush1.bf16.msra.mxu0 %v714_v12  ;;  %v341_v51 = vld [vmem:[%s883_s2] sm:$0x3] }
  0x12   : > { %v344_v8 = vadd.f32 %v343_v6, %v336_v2  ;;  %v348_v9 = vadd.f32 %v347_v7, %v338_v5  ;;  %522 = vmatprep.subr.bf16.mxu0 %v741_v11  ;;  %v384_v53 = vrot.slane %v340_v49, %v383_v47  ;;  %v388_v54 = vrot.slane %v340_v49, %v387_v48  ;;  %v684_v7 = vld [vmem:[%s885_s4] ss:$0 sm:$0xff] }
  0x13   : > { %v399_v57 = vrot.slane %v341_v51, %v383_v47  ;;  %v403_v58 = vrot.slane %v341_v51, %v387_v48 }
  0x14   : > { %345 = vadd.xlane.f32.xlu0 %v344_v8 }
  0x15   : > { %523 = vmatpush1.bf16.msra.mxu0 %v715_v13 }
  0x16   : > { %524 = vmatprep.subr.bf16.mxu0 %v741_v11 }
  0x18   : > { %349 = vadd.xlane.f32.xlu0 %v348_v9 }
  0x19   : > { %525 = vmatpush1.bf16.msra.mxu0 %v716_v14 }
  0x1a   : > { %526 = vmatprep.subr.bf16.mxu0 %v741_v11 }
  0x1d   : > { %527 = vmatpush1.bf16.msra.mxu0 %v717_v31  ;;  %v699_v31 = vld [vmem:[%s887_s6] ss:$0 sm:$0xff] }
  0x1e   : > { %528 = vmatprep.subr.bf16.mxu0 %v741_v11 }
  0x21   : > { %529 = vmatpush1.bf16.msra.mxu0 %v718_v32 }
  0x22   : > { %530 = vmatprep.subr.bf16.mxu0 %v741_v11 }
  0x25   : > { %531 = vmatpush1.bf16.msra.mxu0 %v719_v33 }
  0x26   : > { %532 = vmatprep.subr.bf16.mxu0 %v741_v11 }
  0x29   : > { %533 = vmatpush1.bf16.msra.mxu0 %v720_v34 }
  0x2a   : > { %542 = vmatprep.subr.bf16.mxu0 %v741_v11 }
  0x2d   : > { %543 = vmatpush2.bf16.msra.mxu0 %v721_v35 }
  0x2e   : > { %544 = vmatprep.subr.bf16.mxu0 %v741_v11 }
  0x31   : > { %545 = vmatpush2.bf16.msra.mxu0 %v722_v36  ;;  %v600_v36 = vld [vmem:[%s888_s7] sm:$0x1] }
  0x32   : > { %546 = vmatprep.subr.bf16.mxu0 %v741_v11 }
  0x35   : > { %547 = vmatpush2.bf16.msra.mxu0 %v723_v37 }
  0x36   : > { %548 = vmatprep.subr.bf16.mxu0 %v741_v11 }
  0x39   : > { %549 = vmatpush2.bf16.msra.mxu0 %v724_v38  ;;  %v612_v38 = vld [vmem:[%s889_s8] sm:$0xff] }
  0x9d   : > { %v346_v15 = vpop.xlane.xlu0 %345 }
  0x9e   : > { %v352_v16 = vmul.f32 0.0052083335, %v346_v15 }
  0xa0   : > { %v354_v17 = vsub.f32 %v336_v2, %v352_v16  ;;  %v355_v18 = vsub.f32 %v337_v3, %v352_v16 }
  0xa1   : > { %v350_v19 = vpop.xlane.xlu0 %349 }
  0xa2   : > { %v353_v20 = vmul.f32 0.0052083335, %v350_v19  ;;  %v358_v21 = vmul.f32 %v354_v17, %v354_v17  ;;  %v359_v22 = vmul.f32 %v355_v18, %v355_v18 }
  0xa4   : > { %v356_v23 = vsub.f32 %v338_v5, %v353_v20  ;;  %v357_v24 = vsub.f32 %v339_v4, %v353_v20  ;;  %v362_v25 = vsel %vm342_vm0, %v359_v22, 0.0 }
  0xa5   : > { %v363_v26 = vadd.f32 %v362_v25, %v358_v21 }
  0xa6   : > { %v360_v27 = vmul.f32 %v356_v23, %v356_v23  ;;  %v361_v28 = vmul.f32 %v357_v24, %v357_v24 }
  0xa7   : > { %364 = vadd.xlane.f32.xlu1 %v363_v26 }
  0xa8   : > { %v366_v29 = vsel %vm342_vm0, %v361_v28, 0.0 }
  0xa9   : > { %v367_v30 = vadd.f32 %v366_v29, %v360_v27  ;;  %v698_v29 = vld [vmem:[%s886_s5] ss:$0 sm:$0xff] }
  0xab   : > { %368 = vadd.xlane.f32.xlu1 %v367_v30 }
 0x130   : > { %v365_v39 = vpop.xlane.xlu1 %364 }
 0x131   : > { %v370_v40 = vmul.f32 0.0052083335, %v365_v39 }
 0x133   : > { %v372_v41 = vadd.f32 1e-05, %v370_v40 }
 0x134   : > { %v369_v42 = vpop.xlane.xlu1 %368 }
 0x135   : > { %725 = vrsqrt.f32 %v372_v41  ;;  %v371_v43 = vmul.f32 0.0052083335, %v369_v42 }
 0x137   : > { %v373_v44 = vadd.f32 1e-05, %v371_v43  ;;  %v613_v43 = vld [vmem:[%s889_s8 + $0x8] sm:$0xff] }
 0x139   : > { %727 = vrsqrt.f32 %v373_v44  ;;  %v614_v44 = vld [vmem:[%s889_s8 + $0x10] sm:$0xff] }
 0x142   : > { %v726_v50 = vpop.eup %725 }
 0x143   : > { %v377_v52 = vmul.f32 %v726_v50, %v355_v18  ;;  %v376_v55 = vmul.f32 %v726_v50, %v354_v17 }
 0x145   : > { %v392_v60 = vmul.f32 %v388_v54, %v377_v52  ;;  %v391_v62 = vmul.f32 %v384_v53, %v376_v55 }
 0x146   : > { %v728_v56 = vpop.eup %727 }
 0x147   : > { %v379_v59 = vmul.f32 %v728_v56, %v357_v24  ;;  %v378_v61 = vmul.f32 %v728_v56, %v356_v23  ;;  %v407_v1 = vadd.f32 %v403_v58, %v392_v60  ;;  %v406_v3 = vadd.f32 %v399_v57, %v391_v62 }
 0x149   : > { %v394_v63 = vmul.f32 %v388_v54, %v379_v59  ;;  %v393_v0 = vmul.f32 %v384_v53, %v378_v61 }
 0x14b   : > { %v409_v2 = vadd.f32 %v403_v58, %v394_v63  ;;  %v408_v4 = vadd.f32 %v399_v57, %v393_v0 }
 0x14d   : > { %v411_v5 = vpack.c.bf16 %v409_v2, %v407_v1  ;;  %v410_v6 = vpack.c.bf16 %v408_v4, %v406_v3 }
 0x14f   : > { %697 = vmatprep.mubr.msk.bf16.mxu0 %vm342_vm0, %v411_v5 }
 0x150   : > { %551 = vmatmul.mubr.bf16.vlgmr.msra.gmra.mxu0 %v410_v6 }
 0x210   : > { %v552_v8 = vpop.f32.mrf.mxu0 }
 0x211   : > { %v553_v9 = vadd.f32 %v684_v7, %v552_v8 }
 0x212   : > { %v554_v10 = vpop.f32.mrf.mxu0 }
 0x213   : > { %561 = vadd.xlane.f32.xlu0 %v553_v9 }
 0x214   : > { %v555_v11 = vpop.f32.mrf.mxu0 }
 0x215   : > { %v556_v12 = vadd.f32 %v684_v7, %v555_v11 }
 0x216   : > { %v557_v13 = vpop.f32.mrf.mxu0 }
 0x217   : > { %563 = vadd.xlane.f32.xlu1 %v556_v12 }
 0x29c   : > { %v562_v14 = vpop.xlane.xlu0 %561 }
 0x29d   : > { %v566_v15 = vmul.f32 0.0078125, %v562_v14 }
 0x29f   : > { %v568_v16 = vsub.f32 %v553_v9, %v566_v15 }
 0x2a0   : > { %v564_v17 = vpop.xlane.xlu1 %563 }
 0x2a1   : > { %v567_v18 = vmul.f32 0.0078125, %v564_v17  ;;  %v570_v19 = vmul.f32 %v568_v16, %v568_v16 }
 0x2a3   : > { %v569_v20 = vsub.f32 %v556_v12, %v567_v18  ;;  %572 = vadd.xlane.f32.xlu0 %v570_v19 }
 0x2a5   : > { %v571_v21 = vmul.f32 %v569_v20, %v569_v20 }
 0x2a7   : > { %574 = vadd.xlane.f32.xlu1 %v571_v21 }
 0x32c   : > { %v573_v22 = vpop.xlane.xlu0 %572 }
 0x32d   : > { %v576_v23 = vmul.f32 0.0078125, %v573_v22 }
 0x32f   : > { %v578_v24 = vadd.f32 1e-05, %v576_v23 }
 0x330   : > { %v575_v25 = vpop.xlane.xlu1 %574 }
 0x331   : > { %729 = vrsqrt.f32 %v578_v24  ;;  %v577_v26 = vmul.f32 0.0078125, %v575_v25 }
 0x333   : > { %v579_v27 = vadd.f32 1e-05, %v577_v26 }
 0x335   : > { %731 = vrsqrt.f32 %v579_v27 }
 0x33e   : > { %v730_v28 = vpop.eup %729 }
 0x33f   : > { %v582_v30 = vmul.f32 %v730_v28, %v568_v16 }
 0x341   : > { %v590_v32 = vmul.f32 %v698_v29, %v582_v30 }
 0x342   : > { %v732_v33 = vpop.eup %731 }
 0x343   : > { %v598_v34 = vadd.f32 %v699_v31, %v590_v32  ;;  %v583_v35 = vmul.f32 %v732_v33, %v569_v20 }
 0x345   : > { %v604_v37 = vrot.slane %v598_v34, 7  ;;  %v591_v39 = vmul.f32 %v698_v29, %v583_v35 }
 0x347   : > { %v599_v40 = vadd.f32 %v699_v31, %v591_v39  ;;  %v610_v41 = vsel %vm603_vm1, %v600_v36, %v604_v37 }
 0x348   : > { %v615_v42 = vadd.f32 %v612_v38, %v610_v41 }
 0x349   : > { %v605_v45 = vrot.slane %v599_v40, 7 }
 0x34a   : > { %618 = vst [vmem:[%s332_s18] sm:$0xff] %v615_v42 }
 0x34b   : > { %v606_v46 = vsel %vm603_vm1, %v604_v37, %v605_v45  ;;  %v611_v47 = vsel %vm603_vm1, %v605_v45, 0.0 }
 0x34c   : > { %v616_v48 = vadd.f32 %v613_v43, %v606_v46  ;;  %v617_v49 = vadd.f32 %v614_v44, %v611_v47 }
 0x34e   : > { %619 = vst [vmem:[%s332_s18 + $0x8] sm:$0xff] %v616_v48  ;;  %620 = vst [vmem:[%s332_s18 + $0x10] sm:$0xff] %v617_v49 }
 0x34f PF: > { %s19_s30 = sadd.s32 1, %s739_s30  }
 0x350   : > { %p16_p4 = scmp.ge.s32.totalorder %s19_s30, 4  }
 0x352   :  { %18 = sbr.rel (!%p16_p4) target bundleno = 1 (0x1), region = 86 }

// kernel: _lambda_.5
= control target key start
LH: loop header
LB: loop body
LE: loop exit
PB: predicated region body
PF: predicated region fallthrough
CT: control target
= control target key end

     0   :  { %s4144_s0 = inlined_call_operand.vmem [shape: f32[2,24,128], index: 0, kind: input, shape index: {}]   ;;  %s4145_s1 = inlined_call_operand.vmem [shape: f32[2,1,128], index: 1, kind: input, shape index: {}]   ;;  %s4146_s2 = inlined_call_operand.vmem [shape: f32[2,1,128], index: 2, kind: input, shape index: {}]   ;;  %s4147_s3 = inlined_call_operand.vmem [shape: bf16[2,128,384], index: 3, kind: input, shape index: {}]   ;;  %s4148_s4 = inlined_call_operand.vmem [shape: bf16[2,128,128], index: 4, kind: input, shape index: {}]   ;;  %s4149_s5 = inlined_call_operand.vmem [shape: f32[2,1,128], index: 5, kind: input, shape index: {}]   ;;  %s4150_s6 = inlined_call_operand.vmem [shape: f32[2,1,128], index: 6, kind: input, shape index: {}]   ;;  %s4151_s7 = inlined_call_operand.vmem [shape: f32[2,1,128], index: 7, kind: input, shape index: {}]   ;;  %s4152_s8 = inlined_call_operand.vmem [shape: bf16[2,128,256], index: 8, kind: input, shape index: {}]   ;;  %s4153_s9 = inlined_call_operand.vmem [shape: f32[2,1,256], index: 9, kind: input, shape index: {}]   ;;  %s4154_s10 = inlined_call_operand.vmem [shape: bf16[2,256,128], index: 10, kind: input, shape index: {}]   ;;  %s4155_s11 = inlined_call_operand.vmem [shape: f32[2,1,128], index: 11, kind: input, shape index: {}]   ;;  %s4156_s12 = inlined_call_operand.vmem [shape: f32[1,128], index: 12, kind: input, shape index: {}]   ;;  %s4157_s13 = inlined_call_operand.vmem [shape: f32[1,128], index: 13, kind: input, shape index: {}]   ;;  %s4158_s14 = inlined_call_operand.vmem [shape: bf16[128,128], index: 14, kind: input, shape index: {}]   ;;  %s4159_s15 = inlined_call_operand.vmem [shape: f32[1,128], index: 15, kind: input, shape index: {}]   ;;  %s4160_s16 = inlined_call_operand.hbm [shape: f32[2,1,128], index: 16, kind: output, shape index: {}]  }
   0x1   :  { %4175 = sst [smem:[#allocation18_spill]] %s4144_s0 }
   0x2   :  { %4176 = sst [smem:[#allocation19_spill]] %s4149_s5 }
   0x3   :  { %4177 = sst [smem:[#allocation20_spill]] %s4156_s12 }
   0x4   :  { %4178 = sst [smem:[#allocation21_spill]] %s4157_s13 }
   0x5   :  { %4179 = sst [smem:[#allocation22_spill]] %s4158_s14 }
   0x6   :  { %4180 = sst [smem:[#allocation23_spill]] %s4159_s15 }
   0x7   :  { %4181 = sst [smem:[#allocation24_spill]] %s4160_s16 }
   0x8   :  { %21 = vsyncpa [#allocation4], 0 }
   0x9   :  { %23 = vsyncpa [#allocation4 + $0x1], 0  ;;  %s3622_s21 = smov 0   ;;  %s3624_s22 = smov 0  }
   0xa   :  { %s3626_s23 = smov 0   ;;  %s3628_s24 = smov 0  }
   0xb   :  { %s3630_s25 = smov 0   ;;  %s3632_s26 = smov 0  }
   0xc   :  { %s3634_s27 = smov 0   ;;  %s3636_s28 = smov 0  }
   0xd LB: > { %4182 = sst [smem:[#allocation6_spill]] %s3500_s21  ;;  %s2825_s29 = sadd.s32 4294967295, %s3528_s28   ;;  %s3528_s28 = sphi %s3636_s28, %s29_s28   ;;  %s3524_s27 = sphi %s3634_s27, %s4224_s27   ;;  %s3520_s26 = sphi %s3632_s26, %s4223_s26   ;;  %s3516_s25 = sphi %s3630_s25, %s4222_s25   ;;  %s3512_s24 = sphi %s3628_s24, %s4221_s24   ;;  %s3508_s23 = sphi %s3626_s23, %s4220_s23   ;;  %s3504_s22 = sphi %s3624_s22, %s4226_s22   ;;  %s3500_s21 = sphi %s3622_s21, %s4225_s21  }
   0xe   : > { %4183 = sst [smem:[#allocation7_spill]] %s3508_s23  ;;  %s2826_s30 = sadd.s32 4294967294, %s3528_s28  }
   0xf   : > { %4184 = sst [smem:[#allocation8_spill]] %s3512_s24  ;;  %s38_s0 = sadd.s32 1, %s3520_s26 }
  0x10   : > { %4185 = sst [smem:[#allocation9_spill]] %s3516_s25  ;;  %p39_p0 = scmp.ge.s32.totalorder %s38_s0, 2 }
  0x11   : > { %4186 = sst [smem:[#allocation10_spill]] %s3520_s26  ;;  %s41_s17 = sadd.s32 1, %s3524_s27 }
  0x12   : > { %4187 = sst [smem:[#allocation11_spill]] %s3524_s27  ;;  %p454_p1 = scmp.ne.s32.totalorder %s3508_s23, %s3504_s22 }
  0x13   : > { %4188 = sst [smem:[#allocation12_spill]] %s3528_s28  ;;  %p455_p2 = scmp.eq.s32.totalorder %s2825_s29, 3 }
  0x14   : > { %s4228_s0 = smov (%p39_p0, %s38_s0), 0  ;;  %s4230_s17 = smov (!%p39_p0, %s41_s17), %s3524_s27 }
  0x15   : > { %4189 = sst [smem:[#allocation13_spill]] %s4228_s0  ;;  %p3671_p3 = por %p455_p2, %p454_p1 }
  0x16   : > { %p460_p4 = scmp.ne.s32.totalorder %s3504_s22, %s3500_s21  ;;  %p43_p5 = scmp.ge.s32.totalorder %s4230_s17, 2 }
  0x17   : > { %s4190_s18 = scalar_select %p3671_p3, 1, 0 }
  0x18   : > { %p461_p6 = scmp.eq.s32.totalorder %s2826_s30, 3  ;;  %p2829_p7 = scmp.ge.s32.totalorder %s3528_s28, 1 }
  0x19   : > { %4191 = sst [smem:[#allocation14_spill]] %s4190_s18  ;;  %p574_p8 = scmp.lt.s32.totalorder %s3528_s28, 5 }
  0x1a   : > { %s4232_s17 = smov (%p43_p5, %s4230_s17), 0  ;;  %p3681_p9 = por %p461_p6, %p460_p4 }
  0x1b   : > { %4192 = sst [smem:[#allocation15_spill]] %s4232_s17  ;;  %p575_p10 = pnand %p2829_p7, %p574_p8 }
  0x1c   : > { %s4193_s19 = scalar_select %p3681_p9, 1, 0 }
  0x1d   : > { %s441_s20 = ssub.s32 %s3524_s27, %s4232_s17  ;;  %s444_s29 = sadd.s32 1, %s3508_s23 }
  0x1e   : > { %4194 = sst [smem:[#allocation16_spill]] %s4193_s19  ;;  %p442_p11 = scmp.eq.s32.totalorder %s441_s20, 0 }
  0x1f   : > { %578 = sbr.rel (%p575_p10) target bundleno = 4295 (0x10c7), region = 84  ;;  %p665_p12 = scmp.lt.s32.totalorder (!%p575_p10), %s3516_s25, 1 }
  0x20   : > { %s3689_s0 = scalar_select %p442_p11, %s3508_s23, %s444_s29  }
  0x21   : > { %p670_p13 = scmp.lt.s32.totalorder (!%p575_p10), %s3512_s24, 1  ;;  %s4196_s16 = sld [smem:[#allocation18_spill]] (!%p575_p10) }
  0x22   : > { %4195 = sst [smem:[#allocation17_spill]] %s3689_s0 }
  0x23   : > { %s4199_s5 = sld [smem:[#allocation8_spill]] (!%p575_p10) }
  0x24   : > { %s666_s26 = scalar_select %p665_p12, %s3516_s25, 1 }
  0x25   : > { %s3696_s21 = scalar_select %p670_p13, %s3512_s24, 1 }
  0x26   : > { %s3192_s20 = smul.u32 24, %s666_s26 }
  0x27   : > { %s3193_s25 = smul.u32 192, %s3696_s21  ;;  %s2946_s15 = sshll.u32 %s3696_s21, 6 }
  0x28   : > { %s669_s18 = scalar_lea.vmem %s4196_s16, %s3192_s20  ;;  %s3723_s27 = scalar_lea.vmem %s4148_s4, %s2946_s15 }
  0x29   : > { %s3718_s17 = scalar_lea.vmem %s4147_s3, %s3193_s25  ;;  %s2947_s12 = sshll.u32 %s3696_s21, 7 }
  0x2a   : > { %s2836_s13 = sshll.u32 %s3696_s21, 1  ;;  %s3738_s14 = scalar_lea.vmem %s4152_s8, %s2947_s12 }
  0x2b   : > { %s3743_s15 = scalar_lea.vmem %s4153_s9, %s2836_s13  ;;  %s3748_s23 = scalar_lea.vmem %s4154_s10, %s2947_s12 }
  0x2c   : > { %s711_s19 = scalar_lea.vmem %s4155_s11, %s3696_s21  ;;  %s4198_s20 = sand.u32 1, %s3504_s22  }
  0x2d   : > { %s3756_s16 = scalar_lea.vmem [#allocation3], %s4198_s20  ;;  %p2839_p0 = scmp.ne.s32.totalorder %s4199_s5, 0 }
  0x2f   : > { %716 = sbr.rel (%p2839_p0) target bundleno = 55 (0x37), region = 88 }
  0x34   : > { %v717_v0 = vld [vmem:[%s669_s18] sm:$0xff]  ;;  %v718_v1 = vld [vmem:[%s669_s18 + $0x8] sm:$0xff]  ;;  %v719_v2 = vld [vmem:[%s669_s18 + $0x10] sm:$0xff] }
  0x35   : > { %720 = vst [vmem:[#allocation2 + $0x10] sm:$0xff] %v717_v0  ;;  %721 = vst [vmem:[#allocation2] sm:$0xff] %v718_v1 }
  0x36   : > { %722 = vst [vmem:[#allocation2 + $0x8] sm:$0xff] %v719_v2 }
  0x37 PF: > { %v3271_v6 = vld [vmem:[%s3718_s17 + $0xac] ss:$12 sps:$4 sm:$0xff]   ;;  %v3273_v7 = vld [vmem:[%s3718_s17 + $0xa8] ss:$12 sps:$4 sm:$0xff]   ;;  %v3274_v8 = vld [vmem:[%s3718_s17 + $0xb0] ss:$12 sps:$4 sm:$0xff]   ;;  %s4201_s13 = scalar_lea.vmem %s4146_s2, %s3696_s21  ;;  %s4204_s18 = scalar_lea.vmem %s4150_s6, %s3696_s21 }
  0x38   : > { %942 = vmatprep.subr.bf16.mxu0 %v3271_v6  ;;  %3044 = vmatprep.subr.bf16.mxu1 %v3274_v8  ;;  %v3275_v21 = vld [vmem:[%s3718_s17 + $0x94] ss:$12 sps:$4 sm:$0xff]   ;;  %v3277_v22 = vld [vmem:[%s3718_s17 + $0x90] ss:$12 sps:$4 sm:$0xff]   ;;  %v3278_v23 = vld [vmem:[%s3718_s17 + $0x98] ss:$12 sps:$4 sm:$0xff]   ;;  %s4205_s20 = scalar_lea.vmem %s4151_s7, %s3696_s21 }
  0x39   : > { %943 = vmatpush1.bf16.msra.mxu0 %v3273_v7  ;;  %3045 = vmatpush3.bf16.msra.mxu1 %v3274_v8  ;;  %v3279_v24 = vld [vmem:[%s3718_s17 + $0x7c] ss:$12 sps:$4 sm:$0xff]   ;;  %v3281_v25 = vld [vmem:[%s3718_s17 + $0x78] ss:$12 sps:$4 sm:$0xff]   ;;  %v3282_v26 = vld [vmem:[%s3718_s17 + $0x80] ss:$12 sps:$4 sm:$0xff]  }
  0x3a   : > { %944 = vmatprep.subr.bf16.mxu0 %v3275_v21  ;;  %3046 = vmatprep.subr.bf16.mxu1 %v3278_v23  ;;  %v3283_v27 = vld [vmem:[%s3718_s17 + $0x64] ss:$12 sps:$4 sm:$0xff]   ;;  %v3285_v28 = vld [vmem:[%s3718_s17 + $0x60] ss:$12 sps:$4 sm:$0xff]   ;;  %v3286_v29 = vld [vmem:[%s3718_s17 + $0x68] ss:$12 sps:$4 sm:$0xff]  }
  0x3b   : > { %v3287_v30 = vld [vmem:[%s3718_s17 + $0x4c] ss:$12 sps:$4 sm:$0xff]   ;;  %v3290_v31 = vld [vmem:[%s3718_s17 + $0x50] ss:$12 sps:$4 sm:$0xff]   ;;  %v3289_v32 = vld [vmem:[%s3718_s17 + $0x48] ss:$12 sps:$4 sm:$0xff]  }
  0x3c   : > { %v723_v3 = vld [vmem:[#allocation2 + $0x10] sm:$0xff]  ;;  %v724_v5 = vld [vmem:[#allocation2] sm:$0xff]  ;;  %v3530_v35 = vmov 0   ;;  %v3295_v37 = vld [vmem:[%s3718_s17 + $0x1c] ss:$12 sps:$4 sm:$0xff]   ;;  %vm1177_vm0 = vcmask 1043456  }
  0x3d   : > { %v725_v4 = vld [vmem:[#allocation2 + $0x8] sm:$0xff]  ;;  %728 = vadd.xlane.f32.xlu0 %v723_v3  ;;  %945 = vmatpush1.bf16.msra.mxu0 %v3277_v22  ;;  %v3291_v33 = vld [vmem:[%s3718_s17 + $0x34] ss:$12 sps:$4 sm:$0xff]   ;;  %v3294_v34 = vld [vmem:[%s3718_s17 + $0x38] ss:$12 sps:$4 sm:$0xff]   ;;  %vm1066_vm1 = vcmask 261120  }
  0x3e   : > { %732 = vadd.xlane.f32.xlu1 %v725_v4  ;;  %3047 = vmatpush3.bf16.msra.mxu1 %v3278_v23  ;;  %v3293_v36 = vld [vmem:[%s3718_s17 + $0x30] ss:$12 sps:$4 sm:$0xff]   ;;  %v3298_v38 = vld [vmem:[%s3718_s17 + $0x20] ss:$12 sps:$4 sm:$0xff]   ;;  %v3297_v39 = vld [vmem:[%s3718_s17 + $0x18] ss:$12 sps:$4 sm:$0xff]  }
  0x3f   : > { %946 = vmatprep.subr.bf16.mxu0 %v3279_v24  ;;  %3048 = vmatprep.subr.bf16.mxu1 %v3282_v26  ;;  %v3299_v40 = vld [vmem:[%s3718_s17 + $0x4] ss:$12 sps:$4 sm:$0xff]   ;;  %v3302_v41 = vld [vmem:[%s3718_s17 + $0x8] ss:$12 sps:$4 sm:$0xff]   ;;  %v3301_v42 = vld [vmem:[%s3718_s17] ss:$12 sps:$4 sm:$0xff]   ;;  %s4200_s17 = scalar_lea.vmem %s4145_s1, %s3696_s21 }
  0x40   : > { %974 = vmatprep.mubr.bf16.mxu0 %v3530_v35  ;;  %v2840_v54 = vld [vmem:[%s4200_s17] ss:$0 sm:$0xff]  ;;  %vm1135_vm3 = vcmask 195584   ;;  %s3531_s24 = smov 96   ;;  %s3532_s25 = smov 64  }
  0x41   : > { %730 = vadd.xlane.f32.xlu0 %v724_v5  ;;  %947 = vmatpush1.bf16.msra.mxu0 %v3281_v25  ;;  %v2841_v60 = vld [vmem:[%s4201_s13] ss:$0 sm:$0xff]  ;;  %v1041_v25 = vlaneseq  ;;  %s3533_s30 = smov 32   ;;  %s4202_s0 = sld [smem:[#allocation19_spill]] }
  0x42   : > { %3049 = vmatpush3.bf16.msra.mxu1 %v3282_v26  ;;  %948 = vmatprep.subr.bf16.mxu0 %v3283_v27 }
  0x43   : > { %3050 = vmatprep.subr.bf16.mxu1 %v3286_v29  ;;  %v3841_v27 = vand.u32 127, %v1041_v25 }
  0x45   : > { %949 = vmatpush1.bf16.msra.mxu0 %v3285_v28  ;;  %vm1043_vm2 = vcmp.lt.s32.totalorder %v3841_v27, 17  ;;  %v3307_v27 = vld [vmem:[%s3723_s27 + $0x28] sm:$0xff]  }
  0x46   : > { %3051 = vmatpush3.bf16.msra.mxu1 %v3286_v29  ;;  %950 = vmatprep.subr.bf16.mxu0 %v3287_v30 }
  0x47   : > { %3052 = vmatprep.subr.bf16.mxu1 %v3290_v31  ;;  %s4203_s28 = scalar_lea.vmem %s4202_s0, %s3696_s21  ;;  %s4206_s21 = sld [smem:[#allocation8_spill]] }
  0x49   : > { %951 = vmatpush1.bf16.msra.mxu0 %v3289_v32 }
  0x4a   : > { %3053 = vmatpush3.bf16.msra.mxu1 %v3290_v31  ;;  %952 = vmatprep.subr.bf16.mxu0 %v3291_v33 }
  0x4b   : > { %3054 = vmatprep.subr.bf16.mxu1 %v3294_v34 }
  0x4d   : > { %953 = vmatpush1.bf16.msra.mxu0 %v3293_v36  ;;  %p2934_p1 = scmp.ne.s32.totalorder %s4206_s21, 1 }
  0x4e   : > { %3055 = vmatpush3.bf16.msra.mxu1 %v3294_v34  ;;  %954 = vmatprep.subr.bf16.mxu0 %v3295_v37  ;;  %s4207_s13 = sld [smem:[#allocation22_spill]] (!%p2934_p1) }
  0x4f   : > { %3056 = vmatprep.subr.bf16.mxu1 %v3298_v38  ;;  %s4210_s29 = sld [smem:[#allocation23_spill]] (!%p2934_p1) }
  0x51   : > { %955 = vmatpush1.bf16.msra.mxu0 %v3297_v39 }
  0x52   : > { %3057 = vmatpush3.bf16.msra.mxu1 %v3298_v38  ;;  %956 = vmatprep.subr.bf16.mxu0 %v3299_v40 }
  0x53   : > { %3058 = vmatprep.subr.bf16.mxu1 %v3302_v41 }
  0x55   : > { %957 = vmatpush1.bf16.msra.mxu0 %v3301_v42 }
  0x56   : > { %3059 = vmatpush3.bf16.msra.mxu1 %v3302_v41 }
  0xc6   : > { %v729_v9 = vpop.xlane.xlu0 %728 }
  0xc7   : > { %v733_v10 = vpop.xlane.xlu1 %732  ;;  %v735_v11 = vmul.f32 0.0078125, %v729_v9 }
  0xc8   : > { %v737_v12 = vmul.f32 0.0078125, %v733_v10 }
  0xc9   : > { %v3762_v13 = vsub.f32 %v723_v3, %v735_v11 }
  0xca   : > { %v3764_v14 = vsub.f32 %v725_v4, %v737_v12  ;;  %v731_v15 = vpop.xlane.xlu0 %730 }
  0xcb   : > { %v736_v16 = vmul.f32 0.0078125, %v731_v15  ;;  %v741_v17 = vmul.f32 %v3762_v13, %v3762_v13 }
  0xcc   : > { %v743_v19 = vmul.f32 %v3764_v14, %v3764_v14 }
  0xcd   : > { %v3768_v18 = vsub.f32 %v724_v5, %v736_v16  ;;  %744 = vadd.xlane.f32.xlu1 %v741_v17 }
  0xcf   : > { %v742_v20 = vmul.f32 %v3768_v18, %v3768_v18 }
  0xd1   : > { %748 = vadd.xlane.f32.xlu1 %v743_v19  ;;  %746 = vadd.xlane.f32.xlu0 %v742_v20 }
 0x156   : > { %v745_v43 = vpop.xlane.xlu1 %744 }
 0x157   : > { %v750_v44 = vmul.f32 0.0078125, %v745_v43 }
 0x159   : > { %v753_v45 = vadd.f32 1e-05, %v750_v44 }
 0x15a   : > { %v749_v46 = vpop.xlane.xlu1 %748  ;;  %v747_v47 = vpop.xlane.xlu0 %746 }
 0x15b   : > { %3351 = vrsqrt.f32 %v753_v45  ;;  %v752_v48 = vmul.f32 0.0078125, %v749_v46  ;;  %v751_v49 = vmul.f32 0.0078125, %v747_v47 }
 0x15d   : > { %v755_v50 = vadd.f32 1e-05, %v752_v48  ;;  %v754_v51 = vadd.f32 1e-05, %v751_v49 }
 0x15f   : > { %3353 = vrsqrt.f32 %v755_v50 }
 0x160   : > { %3355 = vrsqrt.f32 %v754_v51 }
 0x168   : > { %v3352_v52 = vpop.eup %3351 }
 0x169   : > { %v759_v53 = vmul.f32 %v3352_v52, %v3762_v13 }
 0x16b   : > { %v768_v59 = vmul.f32 %v2840_v54, %v759_v53 }
 0x16c   : > { %v3354_v55 = vpop.eup %3353 }
 0x16d   : > { %v3356_v56 = vpop.eup %3355  ;;  %v761_v57 = vmul.f32 %v3354_v55, %v3764_v14  ;;  %v777_v0 = vadd.f32 %v2841_v60, %v768_v59 }
 0x16e   : > { %v760_v58 = vmul.f32 %v3356_v56, %v3768_v18 }
 0x16f   : > { %v770_v61 = vmul.f32 %v2840_v54, %v761_v57 }
 0x170   : > { %v769_v62 = vmul.f32 %v2840_v54, %v760_v58 }
 0x171   : > { %v779_v63 = vadd.f32 %v2841_v60, %v770_v61 }
 0x172   : > { %v778_v1 = vadd.f32 %v2841_v60, %v769_v62 }
 0x173   : > { %v781_v2 = vpack.c.bf16 %v779_v63, %v779_v63 }
 0x174   : > { %v780_v3 = vpack.c.bf16 %v778_v1, %v777_v0 }
 0x176   : > { %975 = vmatmul.mubr.bf16.vlgmr.msra.gmra.mxu0 %v780_v3  ;;  %3060 = vmatprep.mubr.bf16.mxu1 %v780_v3 }
 0x177   : > { %3061 = vmatmul.mubr.bf16.vlgmr.msra.gmra.mxu1 %v781_v2  ;;  %984 = vmatprep.mubr.bf16.mxu0 %v3530_v35 }
 0x17e   : > { %985 = vmatmul.mubr.bf16.gmra.mxu0 %v781_v2 }
 0x236   : > { %v976_v4 = vpop.f32.mrf.mxu0 }
 0x237   : > { %v3062_v5 = vpop.f32.mrf.mxu1 }
 0x238   : > { %v3810_v6 = vpack.c.bf16 %v3062_v5, %v3062_v5  ;;  %v978_v7 = vpop.f32.mrf.mxu0 }
 0x239   : > { %v1027_v8 = vpop.f32.mrf.mxu1 }
 0x23a   : > { %v980_v9 = vpop.f32.mrf.mxu0  ;;  %3182 = vmatprep.subr.msk.bf16.mxu1 %vm1177_vm0, %v3810_v6  ;;  %v1179_v10 = vsel %vm1177_vm0, %v3810_v6, 0 }
 0x23b   : > { %v3816_v11 = vpack.c.bf16 %v980_v9, %v976_v4  ;;  %v3063_v12 = vpop.f32.mrf.mxu1  ;;  %3073 = vmatpush3.bf16.msra.mxu1 %v1179_v10  ;;  %v3303_v10 = vld [vmem:[%s3723_s27 + $0x8] sm:$0xff]  }
 0x23c   : > { %v982_v13 = vpop.f32.mrf.mxu0  ;;  %v3304_v12 = vld [vmem:[%s3723_s27] sm:$0xff]  }
 0x23d   : > { %v1030_v14 = vpop.f32.mrf.mxu1  ;;  %3068 = vmatprep.mubr.msk.bf16.mxu0 %vm1066_vm1, %v3816_v11  ;;  %v3826_v20 = vpack.c.bf16 %v982_v13, %v978_v7 }
 0x23e   : > { %v3820_v15 = vpack.c.bf16 %v1030_v14, %v1027_v8  ;;  %v986_v16 = vpop.f32.mrf.mxu0 }
 0x23f   : > { %v1074_v23 = vsel %vm1066_vm1, %v3826_v20, 0  ;;  %v3836_v24 = vpack.c.bf16 %v986_v16, %v986_v16 }
 0x240   : > { %v988_v17 = vpop.f32.mrf.mxu0  ;;  %3074 = vmatprep.subr.bf16.mxu1 %v3820_v15 }
 0x241   : > { %v3823_v18 = vpack.c.bf16 %v988_v17, %v988_v17  ;;  %3075 = vmatpush3.bf16.msra.mxu1 %v3820_v15 }
 0x242   : > { %v990_v19 = vpop.f32.mrf.mxu0 }
 0x243   : > { %3180 = vmatprep.subr.msk.bf16.mxu0 %vm1066_vm1, %v3823_v18  ;;  %v1077_v21 = vsel %vm1066_vm1, %v3823_v18, 0 }
 0x244   : > { %v991_v22 = vpop.f32.mrf.mxu0  ;;  %3065 = vmatpush3.bf16.xpose.msra.mxu0 %v1077_v21 }
 0x245   : > { %3181 = vmatprep.subr.msk.bf16.mxu0 %vm1066_vm1, %v3826_v20 }
 0x24c   : > { %3067 = vmatpush3.bf16.xpose.msra.mxu0 %v1074_v23 }
 0x253   : > { %3069 = vmatmul.mubr.msk.bf16.vlgmr.msra.gmra.mxu0 %vm1066_vm1, %v3836_v24 }
 0x313   : > { %v3070_v26 = vpop.f32.mrf.mxu0 }
 0x314   : > { %v1129_v29 = vmul.f32 0.17677669, %v3070_v26 }
 0x315   : > { %v1113_v28 = vpop.f32.mrf.mxu0 }
 0x316   : > { %v1127_v30 = vmul.f32 0.17677669, %v1113_v28  ;;  %v1134_v37 = vsel %vm1043_vm2, %v1129_v29, -1e+30 }
 0x317   : > { %v3071_v31 = vpop.f32.mrf.mxu0  ;;  %v1142_v39 = vsel %vm1135_vm3, %v1134_v37, -inf }
 0x318   : > { %v1132_v32 = vsel %vm1043_vm2, %v1127_v30, -1e+30 }
 0x319   : > { %v1116_v33 = vpop.f32.mrf.mxu0  ;;  %v1136_v34 = vsel %vm1135_vm3, %v1132_v32, -inf }
 0x31a   : > { %v1128_v36 = vmul.f32 0.17677669, %v1116_v33  ;;  %1137 = vmax.xlane.f32.xlu0 %v1136_v34 }
 0x31c   : > { %v1133_v38 = vsel %vm1043_vm2, %v1128_v36, -1e+30 }
 0x31d   : > { %v1139_v40 = vsel %vm1135_vm3, %v1133_v38, -inf }
 0x31e   : > { %1143 = vmax.xlane.f32.xlu0 %v1142_v39  ;;  %1140 = vmax.xlane.f32.xlu1 %v1139_v40 }
 0x3a3   : > { %v1138_v41 = vpop.xlane.xlu0 %1137 }
 0x3a4   : > { %v1145_v42 = vsub.f32 %v1132_v32, %v1138_v41 }
 0x3a6   : > { %v1148_v43 = vmul.f32 1.442695, %v1145_v42 }
 0x3a7   : > { %v1144_v44 = vpop.xlane.xlu0 %1143  ;;  %v1141_v45 = vpop.xlane.xlu1 %1140 }
 0x3a8   : > { %3357 = vpow2.f32 %v1148_v43  ;;  %v1147_v46 = vsub.f32 %v1134_v37, %v1144_v44  ;;  %v1146_v47 = vsub.f32 %v1133_v38, %v1141_v45 }
 0x3aa   : > { %v1152_v48 = vmul.f32 1.442695, %v1147_v46  ;;  %v1150_v49 = vmul.f32 1.442695, %v1146_v47 }
 0x3ac   : > { %3359 = vpow2.f32 %v1152_v48 }
 0x3ad   : > { %3361 = vpow2.f32 %v1150_v49 }
 0x3b5   : > { %v3358_v50 = vpop.eup %3357 }
 0x3b6   : > { %v1154_v51 = vsel %vm1135_vm3, %v3358_v50, 0.0 }
 0x3b7   : > { %1155 = vadd.xlane.f32.xlu1 %v1154_v51 }
 0x3b9   : > { %v3360_v52 = vpop.eup %3359 }
 0x3ba   : > { %v3362_v53 = vpop.eup %3361  ;;  %v1160_v54 = vsel %vm1135_vm3, %v3360_v52, 0.0 }
 0x3bb   : > { %1161 = vadd.xlane.f32.xlu1 %v1160_v54  ;;  %v1157_v55 = vsel %vm1135_vm3, %v3362_v53, 0.0 }
 0x3bc   : > { %1158 = vadd.xlane.f32.xlu0 %v1157_v55 }
 0x3cc   : > { %1239 = vrot.lane.b32.xlu1 %v3826_v20, %s3531_s24 }
 0x3d0   : > { %1233 = vrot.lane.b32.xlu1 %v3816_v11, %s3531_s24 }
 0x3d2   : > { %1241 = vrot.lane.b32.xlu0 %v3823_v18, %s3531_s24 }
 0x3d4   : > { %1235 = vrot.lane.b32.xlu1 %v3836_v24, %s3531_s24 }
 0x440   : > { %v1156_v56 = vpop.xlane.xlu1 %1155 }
 0x441   : > { %3363 = vrcp.f32 %v1156_v56 }
 0x444   : > { %v1162_v57 = vpop.xlane.xlu1 %1161 }
 0x445   : > { %v1159_v58 = vpop.xlane.xlu0 %1158  ;;  %3365 = vrcp.f32 %v1162_v57 }
 0x446   : > { %3367 = vrcp.f32 %v1159_v58 }
 0x448   : > { %v1240_v63 = vpop.permute.xlu1 %1239 }
 0x449   : > { %v1242_v59 = vpop.permute.xlu0 %1241  ;;  %v1250_v8 = vsel %vm1066_vm1, %v1240_v63, 0 }
 0x44a   : > { %3183 = vmatprep.subr.msk.bf16.mxu1 %vm1066_vm1, %v1242_v59  ;;  %v1253_v5 = vsel %vm1066_vm1, %v1242_v59, 0 }
 0x44c   : > { %v1234_v7 = vpop.permute.xlu1 %1233 }
 0x44e   : > { %v3364_v60 = vpop.eup %3363 }
 0x44f   : > { %v1166_v1 = vmul.f32 %v3364_v60, %v3358_v50 }
 0x450   : > { %v1236_v9 = vpop.permute.xlu1 %1235 }
 0x452   : > { %v3366_v61 = vpop.eup %3365 }
 0x453   : > { %v3368_v62 = vpop.eup %3367  ;;  %v1168_v0 = vmul.f32 %v3366_v61, %v3360_v52 }
 0x454   : > { %v1167_v2 = vmul.f32 %v3368_v62, %v3362_v53 }
 0x455   : > { %v1170_v3 = vpack.c.bf16 %v1168_v0, %v1168_v0 }
 0x456   : > { %v1169_v4 = vpack.c.bf16 %v1167_v2, %v1166_v1 }
 0x458   : > { %3076 = vmatprep.mubr.msk.bf16.mxu1 %vm1135_vm3, %v1169_v4  ;;  %v3306_v4 = vld [vmem:[%s3723_s27 + $0x10] sm:$0xff]  }
 0x459   : > { %3077 = vmatmul.mubr.msk.bf16.vlgmr.msra.gmra.mxu1 %vm1135_vm3, %v1170_v3 }
 0x45a   : > { %3081 = vmatpush3.bf16.xpose.msra.mxu1 %v1253_v5  ;;  %3084 = vmatprep.mubr.msk.bf16.mxu1 %vm1066_vm1, %v1234_v7 }
 0x45b   : > { %3184 = vmatprep.subr.msk.bf16.mxu1 %vm1066_vm1, %v1240_v63 }
 0x462   : > { %3083 = vmatpush3.bf16.xpose.msra.mxu1 %v1250_v8 }
 0x463   : > { %3104 = vmatprep.subr.bf16.mxu1 %v3303_v10 }
 0x469   : > { %3085 = vmatmul.mubr.msk.bf16.vlgmr.msra.gmra.mxu1 %vm1066_vm1, %v1236_v9 }
 0x46a   : > { %3105 = vmatpush3.bf16.msra.mxu1 %v3303_v10 }
 0x46b   : > { %3106 = vmatprep.subr.bf16.mxu1 %v3304_v12 }
 0x46e   : > { %3107 = vmatpush3.bf16.msra.mxu1 %v3304_v12 }
 0x519   : > { %v3078_v13 = vpop.f32.mrf.mxu1 }
 0x51a   : > { %v1230_v21 = vpack.c.bf16 %v3078_v13, %v3078_v13 }
 0x51b   : > { %v1215_v14 = vpop.f32.mrf.mxu1 }
 0x51d   : > { %v3079_v16 = vpop.f32.mrf.mxu1 }
 0x51f   : > { %v1218_v17 = vpop.f32.mrf.mxu1 }
 0x520   : > { %v1229_v19 = vpack.c.bf16 %v1218_v17, %v1215_v14 }
 0x522   : > { %3108 = vmatprep.mubr.msk.bf16.mxu1 %vm1066_vm1, %v1229_v19 }
 0x523   : > { %3109 = vmatmul.mubr.msk.bf16.vlgmr.msra.gmra.mxu1 %vm1066_vm1, %v1230_v21 }
 0x529   : > { %v3086_v22 = vpop.f32.mrf.mxu1 }
 0x52a   : > { %v1305_v26 = vmul.f32 0.17677669, %v3086_v22 }
 0x52b   : > { %v1289_v23 = vpop.f32.mrf.mxu1 }
 0x52c   : > { %v1303_v28 = vmul.f32 0.17677669, %v1289_v23  ;;  %v1308_v34 = vsel %vm1043_vm2, %v1305_v26, -1e+30 }
 0x52d   : > { %v3087_v29 = vpop.f32.mrf.mxu1  ;;  %v1315_v37 = vsel %vm1135_vm3, %v1308_v34, -inf }
 0x52e   : > { %v1306_v30 = vsel %vm1043_vm2, %v1303_v28, -1e+30 }
 0x52f   : > { %v1292_v31 = vpop.f32.mrf.mxu1  ;;  %v1309_v32 = vsel %vm1135_vm3, %v1306_v30, -inf }
 0x530   : > { %v1304_v33 = vmul.f32 0.17677669, %v1292_v31  ;;  %1310 = vmax.xlane.f32.xlu0 %v1309_v32 }
 0x532   : > { %v1307_v36 = vsel %vm1043_vm2, %v1304_v33, -1e+30 }
 0x533   : > { %v1312_v38 = vsel %vm1135_vm3, %v1307_v36, -inf }
 0x534   : > { %1316 = vmax.xlane.f32.xlu0 %v1315_v37  ;;  %1313 = vmax.xlane.f32.xlu1 %v1312_v38 }
 0x5b9   : > { %v1311_v39 = vpop.xlane.xlu0 %1310 }
 0x5ba   : > { %v1318_v40 = vsub.f32 %v1306_v30, %v1311_v39 }
 0x5bc   : > { %v1321_v41 = vmul.f32 1.442695, %v1318_v40 }
 0x5bd   : > { %v1317_v42 = vpop.xlane.xlu0 %1316  ;;  %v1314_v43 = vpop.xlane.xlu1 %1313 }
 0x5be   : > { %3369 = vpow2.f32 %v1321_v41  ;;  %v1320_v44 = vsub.f32 %v1308_v34, %v1317_v42  ;;  %v1319_v45 = vsub.f32 %v1307_v36, %v1314_v43 }
 0x5c0   : > { %v1325_v46 = vmul.f32 1.442695, %v1320_v44  ;;  %v1323_v47 = vmul.f32 1.442695, %v1319_v45 }
 0x5c2   : > { %3371 = vpow2.f32 %v1325_v46 }
 0x5c3   : > { %3373 = vpow2.f32 %v1323_v47 }
 0x5cb   : > { %v3370_v48 = vpop.eup %3369 }
 0x5cc   : > { %v1327_v49 = vsel %vm1135_vm3, %v3370_v48, 0.0 }
 0x5cd   : > { %1328 = vadd.xlane.f32.xlu0 %v1327_v49 }
 0x5cf   : > { %v3372_v50 = vpop.eup %3371 }
 0x5d0   : > { %v3374_v51 = vpop.eup %3373  ;;  %v1333_v52 = vsel %vm1135_vm3, %v3372_v50, 0.0 }
 0x5d1   : > { %1334 = vadd.xlane.f32.xlu1 %v1333_v52  ;;  %v1330_v53 = vsel %vm1135_vm3, %v3374_v51, 0.0 }
 0x5d2   : > { %1331 = vadd.xlane.f32.xlu0 %v1330_v53 }
 0x5e2   : > { %1346 = vrot.lane.b32.xlu1 %v3820_v15, %s3531_s24 }
 0x5e3   : > { %v3890_v54 = vpop.f32.mrf.mxu1 }
 0x5e5   : > { %v3892_v55 = vpop.f32.mrf.mxu1 }
 0x5e6   : > { %1548 = vrot.lane.b32.xlu1 %v3823_v18, %s3532_s25 }
 0x5e7   : > { %v3111_v56 = vpop.f32.mrf.mxu1 }
 0x5e8   : > { %1348 = vrot.lane.b32.xlu0 %v3810_v6, %s3531_s24 }
 0x5ea   : > { %1546 = vrot.lane.b32.xlu1 %v3826_v20, %s3532_s25 }
 0x5ec   : > { %1542 = vrot.lane.b32.xlu0 %v3816_v11, %s3532_s25 }
 0x5ee   : > { %1544 = vrot.lane.b32.xlu1 %v3836_v24, %s3532_s25 }
 0x5f0   : > { %1790 = vrot.lane.b32.xlu0 %v3823_v18, %s3533_s30 }
 0x5f2   : > { %1788 = vrot.lane.b32.xlu1 %v3826_v20, %s3533_s30  ;;  %v3305_v20 = vld [vmem:[%s3723_s27 + $0x18] sm:$0xff]  }
 0x5f4   : > { %1784 = vrot.lane.b32.xlu0 %v3816_v11, %s3533_s30 }
 0x5f6   : > { %1786 = vrot.lane.b32.xlu1 %v3836_v24, %s3533_s30 }
 0x656   : > { %v1329_v57 = vpop.xlane.xlu0 %1328 }
 0x657   : > { %3375 = vrcp.f32 %v1329_v57 }
 0x65a   : > { %v1335_v58 = vpop.xlane.xlu1 %1334 }
 0x65b   : > { %v1332_v59 = vpop.xlane.xlu0 %1331  ;;  %3377 = vrcp.f32 %v1335_v58 }
 0x65c   : > { %3379 = vrcp.f32 %v1332_v59 }
 0x65e   : > { %v1347_v18 = vpop.permute.xlu1 %1346 }
 0x65f   : > { %v1349_v60 = vpop.permute.xlu0 %1348 }
 0x660   : > { %v1358_v61 = vsel %vm1177_vm0, %v1349_v60, 0  ;;  %3185 = vmatprep.subr.msk.bf16.mxu0 %vm1177_vm0, %v1349_v60 }
 0x661   : > { %3089 = vmatpush3.bf16.msra.mxu0 %v1358_v61 }
 0x662   : > { %3090 = vmatprep.subr.bf16.mxu0 %v1347_v18  ;;  %v1549_v5 = vpop.permute.xlu1 %1548 }
 0x663   : > { %v1543_v14 = vpop.permute.xlu0 %1542  ;;  %v1560_v16 = vsel %vm1066_vm1, %v1549_v5, 0 }
 0x664   : > { %v3376_v11 = vpop.eup %3375 }
 0x665   : > { %3091 = vmatpush3.bf16.msra.mxu0 %v1347_v18  ;;  %v1339_v0 = vmul.f32 %v3376_v11, %v3370_v48 }
 0x666   : > { %3096 = vmatprep.subr.bf16.mxu0 %v3305_v20  ;;  %v1547_v17 = vpop.permute.xlu1 %1546 }
 0x667   : > { %v1557_v19 = vsel %vm1066_vm1, %v1547_v17, 0  ;;  %v1791_v21 = vpop.permute.xlu0 %1790 }
 0x668   : > { %v3378_v24 = vpop.eup %3377  ;;  %v1802_v23 = vsel %vm1066_vm1, %v1791_v21, 0 }
 0x669   : > { %v3380_v62 = vpop.eup %3379  ;;  %v1341_v63 = vmul.f32 %v3378_v24, %v3372_v50 }
 0x66a   : > { %v1340_v1 = vmul.f32 %v3380_v62, %v3374_v51  ;;  %v1545_v22 = vpop.permute.xlu1 %1544 }
 0x66b   : > { %v1343_v2 = vpack.c.bf16 %v1341_v63, %v1341_v63  ;;  %v1785_v26 = vpop.permute.xlu0 %1784 }
 0x66c   : > { %v1342_v3 = vpack.c.bf16 %v1340_v1, %v1339_v0 }
 0x66e   : > { %3092 = vmatprep.mubr.msk.bf16.mxu0 %vm1135_vm3, %v1342_v3  ;;  %v1789_v28 = vpop.permute.xlu1 %1788 }
 0x66f   : > { %3093 = vmatmul.mubr.msk.bf16.vlgmr.msra.gmra.mxu0 %vm1135_vm3, %v1343_v2  ;;  %v1799_v29 = vsel %vm1066_vm1, %v1789_v28, 0 }
 0x670   : > { %3097 = vmatpush3.bf16.msra.mxu0 %v3305_v20 }
 0x671   : > { %3098 = vmatprep.subr.bf16.mxu0 %v3306_v4 }
 0x672   : > { %v1787_v30 = vpop.permute.xlu1 %1786 }
 0x674   : > { %3099 = vmatpush3.bf16.msra.mxu0 %v3306_v4 }
 0x675   : > { %3186 = vmatprep.subr.msk.bf16.mxu0 %vm1066_vm1, %v1549_v5 }
 0x72f   : > { %v3094_v7 = vpop.f32.mrf.mxu0 }
 0x730   : > { %v1409_v13 = vpack.c.bf16 %v3094_v7, %v3094_v7 }
 0x731   : > { %v1394_v8 = vpop.f32.mrf.mxu0 }
 0x733   : > { %v3095_v9 = vpop.f32.mrf.mxu0 }
 0x735   : > { %v1397_v10 = vpop.f32.mrf.mxu0 }
 0x736   : > { %v1408_v12 = vpack.c.bf16 %v1397_v10, %v1394_v8 }
 0x738   : > { %3100 = vmatprep.mubr.msk.bf16.mxu0 %vm1066_vm1, %v1408_v12 }
 0x739   : > { %3101 = vmatmul.mubr.msk.bf16.vlgmr.msra.gmra.mxu0 %vm1066_vm1, %v1409_v13 }
 0x73a   : > { %3113 = vmatpush3.bf16.xpose.msra.mxu0 %v1560_v16  ;;  %3116 = vmatprep.mubr.msk.bf16.mxu0 %vm1066_vm1, %v1543_v14 }
 0x73b   : > { %3187 = vmatprep.subr.msk.bf16.mxu0 %vm1066_vm1, %v1547_v17 }
 0x742   : > { %3115 = vmatpush3.bf16.xpose.msra.mxu0 %v1557_v19 }
 0x743   : > { %3189 = vmatprep.subr.msk.bf16.mxu0 %vm1066_vm1, %v1791_v21 }
 0x749   : > { %3117 = vmatmul.mubr.msk.bf16.vlgmr.msra.gmra.mxu0 %vm1066_vm1, %v1545_v22 }
 0x74a   : > { %3137 = vmatpush3.bf16.xpose.msra.mxu0 %v1802_v23  ;;  %3140 = vmatprep.mubr.msk.bf16.mxu0 %vm1066_vm1, %v1785_v26 }
 0x74b   : > { %3190 = vmatprep.subr.msk.bf16.mxu0 %vm1066_vm1, %v1789_v28 }
 0x752   : > { %3139 = vmatpush3.bf16.xpose.msra.mxu0 %v1799_v29 }
 0x759   : > { %3141 = vmatmul.mubr.msk.bf16.vlgmr.msra.gmra.mxu0 %vm1066_vm1, %v1787_v30 }
 0x75a   : > { %2234 = vmatprep.mubr.bf16.mxu0 %v3530_v35 }
 0x7f9   : > { %v3933_v31 = vpop.f32.mrf.mxu0 }
 0x7fb   : > { %v3935_v32 = vpop.f32.mrf.mxu0 }
 0x7fd   : > { %v3103_v33 = vpop.f32.mrf.mxu0 }
 0x7ff   : > { %v3937_v34 = vpop.f32.mrf.mxu0 }
 0x809   : > { %v3118_v36 = vpop.f32.mrf.mxu0 }
 0x80a   : > { %v1612_v38 = vmul.f32 0.17677669, %v3118_v36 }
 0x80b   : > { %v1596_v37 = vpop.f32.mrf.mxu0 }
 0x80c   : > { %v1610_v39 = vmul.f32 0.17677669, %v1596_v37  ;;  %v1615_v45 = vsel %vm1043_vm2, %v1612_v38, -1e+30 }
 0x80d   : > { %v3119_v40 = vpop.f32.mrf.mxu0  ;;  %v1622_v47 = vsel %vm1135_vm3, %v1615_v45, -inf }
 0x80e   : > { %v1613_v41 = vsel %vm1043_vm2, %v1610_v39, -1e+30 }
 0x80f   : > { %v1599_v42 = vpop.f32.mrf.mxu0  ;;  %v1616_v43 = vsel %vm1135_vm3, %v1613_v41, -inf }
 0x810   : > { %v1611_v44 = vmul.f32 0.17677669, %v1599_v42  ;;  %1617 = vmax.xlane.f32.xlu0 %v1616_v43 }
 0x812   : > { %v1614_v46 = vsel %vm1043_vm2, %v1611_v44, -1e+30 }
 0x813   : > { %v1619_v48 = vsel %vm1135_vm3, %v1614_v46, -inf }
 0x814   : > { %1623 = vmax.xlane.f32.xlu0 %v1622_v47  ;;  %1620 = vmax.xlane.f32.xlu1 %v1619_v48 }
 0x819   : > { %v3142_v49 = vpop.f32.mrf.mxu0 }
 0x81a   : > { %v1854_v5 = vmul.f32 0.17677669, %v3142_v49 }
 0x81b   : > { %v1838_v50 = vpop.f32.mrf.mxu0 }
 0x81c   : > { %v1852_v2 = vmul.f32 0.17677669, %v1838_v50  ;;  %v1857_v10 = vsel %vm1043_vm2, %v1854_v5, -1e+30 }
 0x81d   : > { %v3143_v51 = vpop.f32.mrf.mxu0  ;;  %v1864_v12 = vsel %vm1135_vm3, %v1857_v10, -inf }
 0x81e   : > { %v1855_v4 = vsel %vm1043_vm2, %v1852_v2, -1e+30 }
 0x81f   : > { %v1841_v1 = vpop.f32.mrf.mxu0  ;;  %v1858_v8 = vsel %vm1135_vm3, %v1855_v4, -inf }
 0x820   : > { %v1853_v3 = vmul.f32 0.17677669, %v1841_v1 }
 0x822   : > { %v1856_v7 = vsel %vm1043_vm2, %v1853_v3, -1e+30 }
 0x823   : > { %v1861_v9 = vsel %vm1135_vm3, %v1856_v7, -inf }
 0x899   : > { %v1618_v52 = vpop.xlane.xlu0 %1617 }
 0x89a   : > { %v1625_v53 = vsub.f32 %v1613_v41, %v1618_v52  ;;  %v3308_v52 = vld [vmem:[%s3723_s27 + $0x20] sm:$0xff]  }
 0x89c   : > { %v1628_v56 = vmul.f32 1.442695, %v1625_v53  ;;  %v1531_v53 = vpop.f32.mrf.mxu1 }
 0x89d   : > { %v1624_v57 = vpop.xlane.xlu0 %1623  ;;  %v1621_v58 = vpop.xlane.xlu1 %1620 }
 0x89e   : > { %3381 = vpow2.f32 %v1628_v56  ;;  %v1627_v59 = vsub.f32 %v1615_v45, %v1624_v57  ;;  %v1626_v60 = vsub.f32 %v1614_v46, %v1621_v58 }
 0x8a0   : > { %v1632_v61 = vmul.f32 1.442695, %v1627_v59  ;;  %v1630_v18 = vmul.f32 1.442695, %v1626_v60 }
 0x8a2   : > { %3383 = vpow2.f32 %v1632_v61 }
 0x8a3   : > { %3385 = vpow2.f32 %v1630_v18 }
 0x8ab   : > { %v3382_v20 = vpop.eup %3381 }
 0x8ac   : > { %v1634_v11 = vsel %vm1135_vm3, %v3382_v20, 0.0 }
 0x8ad   : > { %1635 = vadd.xlane.f32.xlu0 %v1634_v11 }
 0x8af   : > { %v3384_v24 = vpop.eup %3383 }
 0x8b0   : > { %v3386_v62 = vpop.eup %3385  ;;  %v1640_v63 = vsel %vm1135_vm3, %v3384_v24, 0.0 }
 0x8b1   : > { %1641 = vadd.xlane.f32.xlu1 %v1640_v63  ;;  %v1637_v0 = vsel %vm1135_vm3, %v3386_v62, 0.0 }
 0x8b2   : > { %1638 = vadd.xlane.f32.xlu0 %v1637_v0 }
 0x8c2   : > { %1651 = vrot.lane.b32.xlu1 %v3820_v15, %s3532_s25 }
 0x8c8   : > { %1653 = vrot.lane.b32.xlu0 %v3810_v6, %s3532_s25  ;;  %s4209_s25 = sld [smem:[#allocation21_spill]] (!%p2934_p1) }
 0x8e6   : > { %1859 = vmax.xlane.f32.xlu1 %v1858_v8  ;;  %v3310_v8 = vld [vmem:[%s3723_s27 + $0x30] sm:$0xff]  }
 0x8e7   : > { %1862 = vmax.xlane.f32.xlu0 %v1861_v9  ;;  %v1537_v9 = vadd.f32 %v3890_v54, %v3933_v31 }
 0x8eb   : > { %1865 = vmax.xlane.f32.xlu0 %v1864_v12  ;;  %v1529_v12 = vadd.f32 %v3892_v55, %v3935_v32 }
 0x936   : > { %v1636_v13 = vpop.xlane.xlu0 %1635 }
 0x937   : > { %3387 = vrcp.f32 %v1636_v13 }
 0x93a   : > { %v1642_v14 = vpop.xlane.xlu1 %1641 }
 0x93b   : > { %v1639_v16 = vpop.xlane.xlu0 %1638  ;;  %3389 = vrcp.f32 %v1642_v14 }
 0x93c   : > { %3391 = vrcp.f32 %v1639_v16 }
 0x93e   : > { %v1652_v21 = vpop.permute.xlu1 %1651 }
 0x93f   : > { %v1654_v17 = vpop.permute.xlu0 %1653 }
 0x940   : > { %v1663_v19 = vsel %vm1177_vm0, %v1654_v17, 0  ;;  %3188 = vmatprep.subr.msk.bf16.mxu1 %vm1177_vm0, %v1654_v17 }
 0x941   : > { %3121 = vmatpush3.bf16.msra.mxu1 %v1663_v19  ;;  %v1532_v19 = vadd.f32 %v1531_v53, %v3937_v34 }
 0x942   : > { %3122 = vmatprep.subr.bf16.mxu1 %v1652_v21 }
 0x944   : > { %v3388_v22 = vpop.eup %3387 }
 0x945   : > { %3123 = vmatpush3.bf16.msra.mxu1 %v1652_v21  ;;  %v1646_v29 = vmul.f32 %v3388_v22, %v3382_v20 }
 0x946   : > { %3128 = vmatprep.subr.bf16.mxu1 %v3307_v27 }
 0x948   : > { %v3390_v23 = vpop.eup %3389 }
 0x949   : > { %v3392_v26 = vpop.eup %3391  ;;  %v1648_v28 = vmul.f32 %v3390_v23, %v3384_v24 }
 0x94a   : > { %v1647_v30 = vmul.f32 %v3392_v26, %v3386_v62 }
 0x94b   : > { %v1650_v33 = vpack.c.bf16 %v1648_v28, %v1648_v28 }
 0x94c   : > { %v1649_v36 = vpack.c.bf16 %v1647_v30, %v1646_v29 }
 0x94e   : > { %3124 = vmatprep.mubr.msk.bf16.mxu1 %vm1135_vm3, %v1649_v36 }
 0x94f   : > { %3125 = vmatmul.mubr.msk.bf16.vlgmr.msra.gmra.mxu1 %vm1135_vm3, %v1650_v33  ;;  %v3423_v33 = vld [vmem:[#allocation2 + $0x10] sm:$0xff] }
 0x950   : > { %3129 = vmatpush3.bf16.msra.mxu1 %v3307_v27 }
 0x951   : > { %3130 = vmatprep.subr.bf16.mxu1 %v3308_v52 }
 0x954   : > { %3131 = vmatpush3.bf16.msra.mxu1 %v3308_v52 }
 0x96f   : > { %v1860_v38 = vpop.xlane.xlu1 %1859 }
 0x970   : > { %v1863_v37 = vpop.xlane.xlu0 %1862  ;;  %v1867_v41 = vsub.f32 %v1855_v4, %v1860_v38 }
 0x971   : > { %v1868_v39 = vsub.f32 %v1856_v7, %v1863_v37  ;;  %v3309_v7 = vld [vmem:[%s3723_s27 + $0x38] sm:$0xff]   ;;  %v2898_v37 = vld [vmem:[%s4203_s28] ss:$0 sm:$0xff] }
 0x972   : > { %v1870_v44 = vmul.f32 1.442695, %v1867_v41  ;;  %v3424_v41 = vld [vmem:[#allocation2] sm:$0xff] }
 0x973   : > { %v1872_v40 = vmul.f32 1.442695, %v1868_v39 }
 0x974   : > { %v1866_v42 = vpop.xlane.xlu0 %1865 }
 0x975   : > { %3393 = vpow2.f32 %v1872_v40  ;;  %v1869_v43 = vsub.f32 %v1857_v10, %v1866_v42 }
 0x977   : > { %v1874_v45 = vmul.f32 1.442695, %v1869_v43  ;;  %v3425_v43 = vld [vmem:[#allocation2 + $0x8] sm:$0xff] }
 0x979   : > { %3395 = vpow2.f32 %v1874_v45 }
 0x97a   : > { %3397 = vpow2.f32 %v1870_v44 }
 0x982   : > { %v3394_v46 = vpop.eup %3393 }
 0x983   : > { %v1879_v47 = vsel %vm1135_vm3, %v3394_v46, 0.0 }
 0x984   : > { %1880 = vadd.xlane.f32.xlu0 %v1879_v47  ;;  %v3311_v47 = vld [vmem:[%s3738_s14 + $0x70] ss:$8 sps:$4 sm:$0xff]  }
 0x986   : > { %v3396_v48 = vpop.eup %3395 }
 0x987   : > { %v1882_v49 = vsel %vm1135_vm3, %v3396_v48, 0.0  ;;  %v3398_v50 = vpop.eup %3397 }
 0x988   : > { %1883 = vadd.xlane.f32.xlu1 %v1882_v49  ;;  %v1876_v51 = vsel %vm1135_vm3, %v3398_v50, 0.0 }
 0x98c   : > { %1877 = vadd.xlane.f32.xlu1 %v1876_v51 }
 0x99a   : > { %1895 = vrot.lane.b32.xlu0 %v3810_v6, %s3533_s30 }
 0x99d   : > { %1893 = vrot.lane.b32.xlu1 %v3820_v15, %s3533_s30 }
 0xa0d   : > { %v1881_v56 = vpop.xlane.xlu0 %1880 }
 0xa0f   : > { %v3126_v57 = vpop.f32.mrf.mxu1 }
 0xa10   : > { %v1714_v24 = vpack.c.bf16 %v3126_v57, %v3126_v57 }
 0xa11   : > { %v1896_v58 = vpop.permute.xlu0 %1895  ;;  %v1699_v59 = vpop.f32.mrf.mxu1 }
 0xa12   : > { %v1884_v60 = vpop.xlane.xlu1 %1883  ;;  %3191 = vmatprep.subr.msk.bf16.mxu1 %vm1177_vm0, %v1896_v58  ;;  %v1905_v6 = vsel %vm1177_vm0, %v1896_v58, 0 }
 0xa13   : > { %v3127_v61 = vpop.f32.mrf.mxu1  ;;  %3399 = vrcp.f32 %v1884_v60 }
 0xa14   : > { %3401 = vrcp.f32 %v1881_v56 }
 0xa15   : > { %v1702_v18 = vpop.f32.mrf.mxu1 }
 0xa16   : > { %v1713_v20 = vpack.c.bf16 %v1702_v18, %v1699_v59  ;;  %v1878_v11 = vpop.xlane.xlu1 %1877 }
 0xa17   : > { %3403 = vrcp.f32 %v1878_v11  ;;  %v3314_v11 = vld [vmem:[%s3738_s14 + $0x60] ss:$8 sps:$4 sm:$0xff]  }
 0xa18   : > { %3132 = vmatprep.mubr.msk.bf16.mxu1 %vm1066_vm1, %v1713_v20  ;;  %v3316_v20 = vld [vmem:[%s3738_s14 + $0x64] ss:$8 sps:$4 sm:$0xff]  }
 0xa19   : > { %3133 = vmatmul.mubr.msk.bf16.vlgmr.msra.gmra.mxu1 %vm1066_vm1, %v1714_v24  ;;  %v3319_v24 = vld [vmem:[%s3738_s14 + $0x54] ss:$8 sps:$4 sm:$0xff]  }
 0xa1a   : > { %3145 = vmatpush3.bf16.msra.mxu1 %v1905_v6  ;;  %v1894_v15 = vpop.permute.xlu1 %1893  ;;  %v3317_v6 = vld [vmem:[%s3738_s14 + $0x50] ss:$8 sps:$4 sm:$0xff]  }
 0xa1b   : > { %3146 = vmatprep.subr.bf16.mxu1 %v1894_v15 }
 0xa1e   : > { %3147 = vmatpush3.bf16.msra.mxu1 %v1894_v15  ;;  %v3322_v15 = vld [vmem:[%s3738_s14 + $0x44] ss:$8 sps:$4 sm:$0xff]  }
 0xa1f   : > { %3152 = vmatprep.subr.bf16.mxu1 %v3309_v7 }
 0xa20   : > { %v3400_v62 = vpop.eup %3399 }
 0xa21   : > { %v3402_v63 = vpop.eup %3401  ;;  %v1890_v1 = vmul.f32 %v3400_v62, %v3396_v48  ;;  %v3313_v48 = vld [vmem:[%s3738_s14 + $0x74] ss:$8 sps:$4 sm:$0xff]   ;;  %v3320_v62 = vld [vmem:[%s3738_s14 + $0x40] ss:$8 sps:$4 sm:$0xff]  }
 0xa22   : > { %v1889_v3 = vmul.f32 %v3402_v63, %v3394_v46  ;;  %2202 = vmatprep.subr.bf16.mxu0 %v3313_v48  ;;  %v3323_v63 = vld [vmem:[%s3738_s14 + $0x30] ss:$8 sps:$4 sm:$0xff]  }
 0xa23   : > { %v1892_v5 = vpack.c.bf16 %v1890_v1, %v1890_v1  ;;  %2203 = vmatpush1.bf16.msra.mxu0 %v3311_v47  ;;  %v3328_v1 = vld [vmem:[%s3738_s14 + $0x24] ss:$8 sps:$4 sm:$0xff]   ;;  %v3343_v48 = vld [vmem:[%s3748_s23 + $0x58] sm:$0xff]  }
 0xa24   : > { %v3404_v0 = vpop.eup %3403  ;;  %2204 = vmatprep.subr.bf16.mxu0 %v3316_v20  ;;  %v3342_v47 = vld [vmem:[%s3748_s23 + $0x20] sm:$0xff]  }
 0xa25   : > { %v1888_v2 = vmul.f32 %v3404_v0, %v3398_v50  ;;  %v3325_v0 = vld [vmem:[%s3738_s14 + $0x34] ss:$8 sps:$4 sm:$0xff]  }
 0xa27   : > { %v1891_v4 = vpack.c.bf16 %v1889_v3, %v1888_v2  ;;  %2205 = vmatpush1.bf16.msra.mxu0 %v3314_v11  ;;  %v3326_v2 = vld [vmem:[%s3738_s14 + $0x20] ss:$8 sps:$4 sm:$0xff]   ;;  %v3331_v3 = vld [vmem:[%s3738_s14 + $0x14] ss:$8 sps:$4 sm:$0xff]  }
 0xa28   : > { %2206 = vmatprep.subr.bf16.mxu0 %v3319_v24 }
 0xa29   : > { %3148 = vmatprep.mubr.msk.bf16.mxu1 %vm1135_vm3, %v1891_v4  ;;  %v3329_v4 = vld [vmem:[%s3738_s14 + $0x10] ss:$8 sps:$4 sm:$0xff]  }
 0xa2a   : > { %3149 = vmatmul.mubr.msk.bf16.vlgmr.msra.gmra.mxu1 %vm1135_vm3, %v1892_v5  ;;  %v3334_v5 = vld [vmem:[%s3738_s14 + $0x4] ss:$8 sps:$4 sm:$0xff]  }
 0xa2b   : > { %3153 = vmatpush3.bf16.msra.mxu1 %v3309_v7  ;;  %2207 = vmatpush1.bf16.msra.mxu0 %v3317_v6  ;;  %v3332_v7 = vld [vmem:[%s3738_s14] ss:$8 sps:$4 sm:$0xff]  }
 0xa2c   : > { %3154 = vmatprep.subr.bf16.mxu1 %v3310_v8  ;;  %2208 = vmatprep.subr.bf16.mxu0 %v3322_v15 }
 0xa2f   : > { %3155 = vmatpush3.bf16.msra.mxu1 %v3310_v8  ;;  %2209 = vmatpush1.bf16.msra.mxu0 %v3320_v62 }
 0xa30   : > { %2210 = vmatprep.subr.bf16.mxu0 %v3325_v0 }
 0xa33   : > { %2211 = vmatpush1.bf16.msra.mxu0 %v3323_v63 }
 0xa34   : > { %2212 = vmatprep.subr.bf16.mxu0 %v3328_v1 }
 0xa37   : > { %2213 = vmatpush1.bf16.msra.mxu0 %v3326_v2 }
 0xa38   : > { %2214 = vmatprep.subr.bf16.mxu0 %v3331_v3 }
 0xa3b   : > { %2215 = vmatpush1.bf16.msra.mxu0 %v3329_v4 }
 0xa3c   : > { %2216 = vmatprep.subr.bf16.mxu0 %v3334_v5 }
 0xa3f   : > { %2217 = vmatpush1.bf16.msra.mxu0 %v3332_v7 }
 0xad9   : > { %v3134_v10 = vpop.f32.mrf.mxu1 }
 0xada   : > { %v1783_v13 = vadd.f32 %v3134_v10, %v1537_v9 }
 0xadb   : > { %v1767_v14 = vpop.f32.mrf.mxu1 }
 0xadc   : > { %v1781_v16 = vadd.f32 %v1767_v14, %v1529_v12 }
 0xadd   : > { %v3135_v17 = vpop.f32.mrf.mxu1 }
 0xadf   : > { %v1770_v21 = vpop.f32.mrf.mxu1 }
 0xae0   : > { %v1782_v27 = vadd.f32 %v1770_v21, %v1532_v19 }
 0xaea   : > { %v3150_v22 = vpop.f32.mrf.mxu1 }
 0xaeb   : > { %v1956_v30 = vpack.c.bf16 %v3150_v22, %v3150_v22  ;;  %v2899_v22 = vld [vmem:[%s4204_s18] ss:$0 sm:$0xff] }
 0xaec   : > { %v1941_v23 = vpop.f32.mrf.mxu1 }
 0xaee   : > { %v3151_v26 = vpop.f32.mrf.mxu1 }
 0xaf0   : > { %v1944_v28 = vpop.f32.mrf.mxu1 }
 0xaf1   : > { %v1955_v29 = vpack.c.bf16 %v1944_v28, %v1941_v23 }
 0xaf3   : > { %3156 = vmatprep.mubr.msk.bf16.mxu1 %vm1066_vm1, %v1955_v29  ;;  %v2900_v29 = vld [vmem:[%s4205_s20] ss:$0 sm:$0xff] }
 0xaf4   : > { %3157 = vmatmul.mubr.msk.bf16.vlgmr.msra.gmra.mxu1 %vm1066_vm1, %v1956_v30 }
 0xbb4   : > { %v3158_v54 = vpop.f32.mrf.mxu1 }
 0xbb5   : > { %v2025_v38 = vadd.f32 %v3158_v54, %v1783_v13 }
 0xbb6   : > { %v2009_v55 = vpop.f32.mrf.mxu1 }
 0xbb7   : > { %v2023_v31 = vadd.f32 %v2009_v55, %v1781_v16  ;;  %v2028_v44 = vadd.f32 %v3425_v43, %v2025_v38  ;;  %v3335_v38 = vld [vmem:[%s3748_s23 + $0x78] sm:$0xff]   ;;  %v3339_v43 = vld [vmem:[%s3748_s23 + $0x68] sm:$0xff]  }
 0xbb8   : > { %v3159_v32 = vpop.f32.mrf.mxu1  ;;  %3007 = vmatprep.subr.bf16.mxu1 %v3335_v38 }
 0xbb9   : > { %v2026_v34 = vadd.f32 %v3423_v33, %v2023_v31  ;;  %v4003_v46 = vadd.f32 %v2898_v37, %v2028_v44  ;;  %v3340_v44 = vld [vmem:[%s3748_s23 + $0x28] sm:$0xff]  }
 0xbba   : > { %v2012_v36 = vpop.f32.mrf.mxu1 }
 0xbbb   : > { %v2024_v39 = vadd.f32 %v2012_v36, %v1782_v27  ;;  %v3997_v40 = vadd.f32 %v2898_v37, %v2026_v34 }
 0xbbd   : > { %v2027_v42 = vadd.f32 %v3424_v41, %v2024_v39  ;;  %2041 = vadd.xlane.f32.xlu1 %v3997_v40  ;;  %v3336_v39 = vld [vmem:[%s3748_s23 + $0x38] sm:$0xff]   ;;  %v3337_v41 = vld [vmem:[%s3748_s23 + $0x70] sm:$0xff]  }
 0xbbe   : > { %3008 = vmatpush3.bf16.msra.mxu1 %v3336_v39 }
 0xbbf   : > { %v4000_v45 = vadd.f32 %v2898_v37, %v2027_v42  ;;  %v3338_v42 = vld [vmem:[%s3748_s23 + $0x30] sm:$0xff]   ;;  %3009 = vmatprep.subr.bf16.mxu1 %v3337_v41 }
 0xbc1   : > { %2043 = vadd.xlane.f32.xlu0 %v4000_v45 }
 0xbc2   : > { %3010 = vmatpush3.bf16.msra.mxu1 %v3338_v42 }
 0xbc3   : > { %3011 = vmatprep.subr.bf16.mxu1 %v3339_v43 }
 0xbc5   : > { %2045 = vadd.xlane.f32.xlu0 %v4003_v46 }
 0xbc6   : > { %3012 = vmatpush3.bf16.msra.mxu1 %v3340_v44 }
 0xc46   : > { %v2042_v49 = vpop.xlane.xlu1 %2041 }
 0xc47   : > { %v2047_v50 = vmul.f32 0.0078125, %v2042_v49  ;;  %v3344_v49 = vld [vmem:[%s3748_s23 + $0x18] sm:$0xff]  }
 0xc49   : > { %v2050_v51 = vsub.f32 %v3997_v40, %v2047_v50  ;;  %v3345_v50 = vld [vmem:[%s3748_s23 + $0x50] sm:$0xff]  }
 0xc4a   : > { %v2044_v52 = vpop.xlane.xlu0 %2043 }
 0xc4b   : > { %v2048_v53 = vmul.f32 0.0078125, %v2044_v52  ;;  %v2053_v56 = vmul.f32 %v2050_v51, %v2050_v51  ;;  %v3347_v52 = vld [vmem:[%s3748_s23 + $0x48] sm:$0xff]  }
 0xc4d   : > { %v2051_v57 = vsub.f32 %v4000_v45, %v2048_v53  ;;  %2056 = vadd.xlane.f32.xlu1 %v2053_v56  ;;  %v3348_v53 = vld [vmem:[%s3748_s23 + $0x8] sm:$0xff]   ;;  %v3349_v56 = vld [vmem:[%s3748_s23 + $0x40] sm:$0xff]  }
 0xc4e   : > { %v2046_v58 = vpop.xlane.xlu0 %2045 }
 0xc4f   : > { %v2049_v59 = vmul.f32 0.0078125, %v2046_v58  ;;  %v2054_v60 = vmul.f32 %v2051_v57, %v2051_v57  ;;  %v2113_v58 = vshrl.u32 %v1041_v25, 7 }
 0xc51   : > { %v2052_v61 = vsub.f32 %v4003_v46, %v2049_v59  ;;  %2058 = vadd.xlane.f32.xlu0 %v2054_v60  ;;  %v2114_v59 = vsub.s32 0, %v2113_v58  ;;  %v2110_v60 = vld [vmem:[%s3743_s15] sm:$0x3] }
 0xc53   : > { %v2055_v18 = vmul.f32 %v2052_v61, %v2052_v61 }
 0xc55   : > { %2060 = vadd.xlane.f32.xlu1 %v2055_v18  ;;  %v2115_v18 = vrot.slane %v2110_v60, %v2114_v59 }
 0xcd6   : > { %v2057_v8 = vpop.xlane.xlu1 %2056 }
 0xcd7   : > { %v2062_v9 = vmul.f32 0.0078125, %v2057_v8 }
 0xcd9   : > { %v2065_v10 = vadd.f32 1e-05, %v2062_v9 }
 0xcda   : > { %v2059_v12 = vpop.xlane.xlu0 %2058 }
 0xcdb   : > { %3405 = vrsqrt.f32 %v2065_v10  ;;  %v2063_v13 = vmul.f32 0.0078125, %v2059_v12 }
 0xcdd   : > { %v2066_v14 = vadd.f32 1e-05, %v2063_v13 }
 0xcde   : > { %v2061_v16 = vpop.xlane.xlu1 %2060 }
 0xcdf   : > { %3407 = vrsqrt.f32 %v2066_v14  ;;  %v2064_v17 = vmul.f32 0.0078125, %v2061_v16 }
 0xce1   : > { %v2067_v19 = vadd.f32 1e-05, %v2064_v17 }
 0xce3   : > { %3409 = vrsqrt.f32 %v2067_v19 }
 0xce8   : > { %v3406_v21 = vpop.eup %3405 }
 0xce9   : > { %v2071_v27 = vmul.f32 %v3406_v21, %v2050_v51  ;;  %v3346_v51 = vld [vmem:[%s3748_s23 + $0x10] sm:$0xff]  }
 0xceb   : > { %v2080_v28 = vmul.f32 %v2899_v22, %v2071_v27 }
 0xcec   : > { %v3408_v23 = vpop.eup %3407 }
 0xced   : > { %v2072_v26 = vmul.f32 %v3408_v23, %v2051_v57  ;;  %v2089_v55 = vadd.f32 %v2900_v29, %v2080_v28  ;;  %v3350_v57 = vld [vmem:[%s3748_s23] sm:$0xff]  }
 0xcef   : > { %v2081_v30 = vmul.f32 %v2899_v22, %v2072_v26 }
 0xcf0   : > { %v3410_v54 = vpop.eup %3409 }
 0xcf1   : > { %v2090_v31 = vadd.f32 %v2900_v29, %v2081_v30  ;;  %v2073_v32 = vmul.f32 %v3410_v54, %v2052_v61  ;;  %v2118_v61 = vsub.s32 1, %v2113_v58 }
 0xcf3   : > { %v2092_v33 = vpack.c.bf16 %v2090_v31, %v2089_v55  ;;  %v2082_v34 = vmul.f32 %v2899_v22, %v2073_v32  ;;  %v2119_v20 = vrot.slane %v2110_v60, %v2118_v61 }
 0xcf5   : > { %2235 = vmatmul.mubr.bf16.vlgmr.msra.gmra.mxu0 %v2092_v33  ;;  %v2091_v36 = vadd.f32 %v2900_v29, %v2082_v34 }
 0xcf6   : > { %2244 = vmatprep.mubr.bf16.mxu0 %v3530_v35  ;;  %v3341_v35 = vld [vmem:[%s3748_s23 + $0x60] sm:$0xff]  }
 0xcf7   : > { %v2093_v37 = vpack.c.bf16 %v2091_v36, %v2091_v36  ;;  %3013 = vmatprep.subr.bf16.mxu1 %v3341_v35 }
 0xcf8   : > { %3014 = vmatpush3.bf16.msra.mxu1 %v3342_v47 }
 0xcf9   : > { %3015 = vmatprep.subr.bf16.mxu1 %v3343_v48 }
 0xcfc   : > { %3016 = vmatpush3.bf16.msra.mxu1 %v3344_v49 }
 0xcfd   : > { %2245 = vmatmul.mubr.bf16.gmra.mxu0 %v2093_v37  ;;  %3017 = vmatprep.subr.bf16.mxu1 %v3345_v50 }
 0xd00   : > { %3018 = vmatpush3.bf16.msra.mxu1 %v3346_v51 }
 0xd01   : > { %3019 = vmatprep.subr.bf16.mxu1 %v3347_v52 }
 0xd04   : > { %3020 = vmatpush3.bf16.msra.mxu1 %v3348_v53 }
 0xd05   : > { %3021 = vmatprep.subr.bf16.mxu1 %v3349_v56 }
 0xd08   : > { %3022 = vmatpush3.bf16.msra.mxu1 %v3350_v57 }
 0xdb5   : > { %v2236_v11 = vpop.f32.mrf.mxu0 }
 0xdb6   : > { %v2237_v24 = vadd.f32 %v2236_v11, %v2115_v18 }
 0xdb7   : > { %v2238_v6 = vpop.f32.mrf.mxu0 }
 0xdb8   : > { %v2259_v15 = vmul.f32 0.044715, %v2237_v24  ;;  %v2239_v62 = vadd.f32 %v2238_v6, %v2119_v20  ;;  %v2253_v58 = vmul.f32 0.5, %v2237_v24 }
 0xdb9   : > { %v2240_v63 = vpop.f32.mrf.mxu0 }
 0xdba   : > { %v2265_v0 = vmul.f32 %v2259_v15, %v2237_v24  ;;  %v2260_v1 = vmul.f32 0.044715, %v2239_v62  ;;  %v2241_v2 = vadd.f32 %v2240_v63, %v2115_v18  ;;  %v2254_v53 = vmul.f32 0.5, %v2239_v62 }
 0xdbb   : > { %v2242_v3 = vpop.f32.mrf.mxu0 }
 0xdbc   : > { %v2271_v4 = vmul.f32 %v2265_v0, %v2237_v24  ;;  %v2266_v5 = vmul.f32 %v2260_v1, %v2239_v62  ;;  %v2261_v7 = vmul.f32 0.044715, %v2241_v2  ;;  %v2243_v8 = vadd.f32 %v2242_v3, %v2119_v20 }
 0xdbd   : > { %v2246_v25 = vpop.f32.mrf.mxu0  ;;  %v2255_v51 = vmul.f32 0.5, %v2241_v2 }
 0xdbe   : > { %v2277_v9 = vadd.f32 %v2271_v4, %v2237_v24  ;;  %v2272_v10 = vmul.f32 %v2266_v5, %v2239_v62  ;;  %v2267_v12 = vmul.f32 %v2261_v7, %v2241_v2  ;;  %v2262_v13 = vmul.f32 0.044715, %v2243_v8 }
 0xdbf   : > { %v2247_v14 = vadd.f32 %v2246_v25, %v2115_v18  ;;  %v2248_v16 = vpop.f32.mrf.mxu0  ;;  %v2256_v56 = vmul.f32 0.5, %v2243_v8  ;;  %v2933_v25 = vld [vmem:[%s711_s19] ss:$0 sm:$0xff]  ;;  %s4208_s19 = sld [smem:[#allocation20_spill]] (!%p2934_p1) }
 0xdc0   : > { %v2283_v17 = vmul.f32 0.7978846, %v2277_v9  ;;  %v2273_v19 = vmul.f32 %v2267_v12, %v2241_v2  ;;  %v2268_v21 = vmul.f32 %v2262_v13, %v2243_v8  ;;  %v2249_v27 = vadd.f32 %v2248_v16, %v2119_v20 }
 0xdc1   : > { %v2263_v22 = vmul.f32 0.044715, %v2247_v14  ;;  %v2250_v23 = vpop.f32.mrf.mxu0  ;;  %v2278_v26 = vadd.f32 %v2272_v10, %v2239_v62 }
 0xdc2   : > { %v2279_v28 = vadd.f32 %v2273_v19, %v2241_v2  ;;  %v2274_v29 = vmul.f32 %v2268_v21, %v2243_v8  ;;  %v2264_v30 = vmul.f32 0.044715, %v2249_v27  ;;  %3411 = vtanh.f32 %v2283_v17 }
 0xdc3   : > { %v2269_v54 = vmul.f32 %v2263_v22, %v2247_v14  ;;  %v2251_v55 = vpop.f32.mrf.mxu0  ;;  %v2284_v31 = vmul.f32 0.7978846, %v2278_v26  ;;  %v2258_v15 = vmul.f32 0.5, %v2249_v27  ;;  %v2257_v2 = vmul.f32 0.5, %v2247_v14 }
 0xdc4   : > { %v2285_v32 = vmul.f32 0.7978846, %v2279_v28  ;;  %v2270_v33 = vmul.f32 %v2264_v30, %v2249_v27  ;;  %v2280_v34 = vadd.f32 %v2274_v29, %v2243_v8 }
 0xdc5   : > { %3413 = vtanh.f32 %v2284_v31  ;;  %v2275_v36 = vmul.f32 %v2269_v54, %v2247_v14 }
 0xdc6   : > { %3415 = vtanh.f32 %v2285_v32  ;;  %v2286_v37 = vmul.f32 0.7978846, %v2280_v34  ;;  %v2276_v38 = vmul.f32 %v2270_v33, %v2249_v27 }
 0xdc7   : > { %v2281_v39 = vadd.f32 %v2275_v36, %v2247_v14 }
 0xdc8   : > { %3417 = vtanh.f32 %v2286_v37  ;;  %v2282_v41 = vadd.f32 %v2276_v38, %v2249_v27 }
 0xdc9   : > { %v2287_v42 = vmul.f32 0.7978846, %v2281_v39 }
 0xdca   : > { %v2288_v43 = vmul.f32 0.7978846, %v2282_v41 }
 0xdcb   : > { %3419 = vtanh.f32 %v2287_v42 }
 0xdcc   : > { %3421 = vtanh.f32 %v2288_v43 }
 0xdcf   : > { %v3412_v44 = vpop.eup %3411 }
 0xdd0   : > { %v2295_v52 = vadd.f32 1.0, %v3412_v44 }
 0xdd2   : > { %v3414_v35 = vpop.eup %3413  ;;  %v2301_v11 = vmul.f32 %v2295_v52, %v2253_v58 }
 0xdd3   : > { %v3416_v47 = vpop.eup %3415  ;;  %v2296_v48 = vadd.f32 1.0, %v3414_v35 }
 0xdd4   : > { %v2297_v49 = vadd.f32 1.0, %v3416_v47 }
 0xdd5   : > { %v3418_v50 = vpop.eup %3417  ;;  %v2302_v61 = vmul.f32 %v2296_v48, %v2254_v53 }
 0xdd6   : > { %v2298_v57 = vadd.f32 1.0, %v3418_v50  ;;  %v2303_v59 = vmul.f32 %v2297_v49, %v2255_v51 }
 0xdd8   : > { %v3420_v60 = vpop.eup %3419  ;;  %v2304_v18 = vmul.f32 %v2298_v57, %v2256_v56  ;;  %v2307_v0 = vpack.c.bf16 %v2303_v59, %v2301_v11 }
 0xdd9   : > { %v3422_v20 = vpop.eup %3421  ;;  %v2299_v1 = vadd.f32 1.0, %v3420_v60 }
 0xdda   : > { %v2308_v6 = vpack.c.bf16 %v2304_v18, %v2302_v61  ;;  %v2300_v63 = vadd.f32 1.0, %v3422_v20 }
 0xddb   : > { %v2305_v4 = vmul.f32 %v2299_v1, %v2257_v2 }
 0xddc   : > { %2471 = vmatprep.mubr.bf16.mxu1 %v2308_v6  ;;  %v2306_v3 = vmul.f32 %v2300_v63, %v2258_v15 }
 0xddd   : > { %2472 = vmatmul.mubr.bf16.vlgmr.msra.gmra.mxu1 %v2307_v0  ;;  %v2309_v24 = vpack.c.bf16 %v2305_v4, %v2305_v4 }
 0xdde   : > { %v2310_v62 = vpack.c.bf16 %v2306_v3, %v2306_v3 }
 0xde0   : > { %2479 = vmatprep.mubr.bf16.mxu1 %v2310_v62 }
 0xde5   : > { %2480 = vmatmul.mubr.bf16.gmra.mxu1 %v2309_v24 }
 0xe9d   : > { %v3023_v5 = vpop.f32.mrf.mxu1 }
 0xe9f   : > { %v3024_v7 = vpop.f32.mrf.mxu1 }
 0xea0   : > { %v3025_v8 = vadd.f32 %v3024_v7, %v3023_v5 }
 0xea1   : > { %v3026_v9 = vpop.f32.mrf.mxu1 }
 0xea2   : > { %v2487_v10 = vadd.f32 %v3025_v8, %v3997_v40 }
 0xea3   : > { %v3027_v12 = vpop.f32.mrf.mxu1 }
 0xea4   : > { %v2497_v13 = vadd.f32 %v2933_v25, %v2487_v10  ;;  %v3028_v16 = vadd.f32 %v3027_v12, %v3026_v9 }
 0xea5   : > { %v3029_v14 = vpop.f32.mrf.mxu1 }
 0xea6   : > { %2500 = vst [vmem:[#allocation2 + $0x10] sm:$0xff] %v2497_v13  ;;  %v2488_v17 = vadd.f32 %v3028_v16, %v4000_v45 }
 0xea7   : > { %v3030_v19 = vpop.f32.mrf.mxu1 }
 0xea8   : > { %v2498_v21 = vadd.f32 %v2933_v25, %v2488_v17  ;;  %v3031_v27 = vadd.f32 %v3030_v19, %v3029_v14 }
 0xea9   : > { %v3032_v22 = vpop.f32.mrf.mxu1 }
 0xeaa   : > { %2501 = vst [vmem:[#allocation2] sm:$0xff] %v2498_v21  ;;  %v2489_v23 = vadd.f32 %v3031_v27, %v4003_v46  ;;  %2506 = sbr.rel (%p2934_p1) target bundleno = 4269 (0x10ad), region = 92 }
 0xeab   : > { %v3033_v26 = vpop.f32.mrf.mxu1 }
 0xeac   : > { %v2499_v28 = vadd.f32 %v2933_v25, %v2489_v23 }
 0xeae   : > { %2502 = vst [vmem:[#allocation2 + $0x8] sm:$0xff] %v2499_v28 }
 0xeaf   : > { %vm2509_vm4 = vcmask 1040384   ;;  %v3426_v45 = vld [vmem:[%s4207_s13 + $0x38] sm:$0xff]   ;;  %v3534_v29 = vmov 0.0   ;;  %v3427_v46 = vld [vmem:[%s4207_s13 + $0x30] sm:$0xff]   ;;  %v3428_v33 = vld [vmem:[%s4207_s13 + $0x28] sm:$0xff]   ;;  %vm3535_vm5 = vmmov 0  }
 0xeb0   : > { %v2510_v40 = vsel %vm2509_vm4, %v2497_v13, 0.0  ;;  %3160 = vmatprep.subr.bf16.mxu0 %v3534_v29  ;;  %v3429_v34 = vld [vmem:[%s4207_s13 + $0x20] sm:$0xff]   ;;  %3176 = vmatprep.mubr.msk.bf16.mxu0 %vm3535_vm5, %v3534_v29  ;;  %v3430_v36 = vld [vmem:[%s4207_s13 + $0x18] sm:$0xff]   ;;  %v3431_v37 = vld [vmem:[%s4207_s13 + $0x10] sm:$0xff]  }
 0xeb1   : > { %2511 = vadd.xlane.f32.xlu0 %v2510_v40  ;;  %3161 = vmatpush3.bf16.msra.mxu0 %v3426_v45  ;;  %v3432_v38 = vld [vmem:[%s4207_s13 + $0x8] sm:$0xff]   ;;  %v3433_v39 = vld [vmem:[%s4207_s13] sm:$0xff]  }
 0xeb2   : > { %3162 = vmatprep.subr.bf16.mxu0 %v3534_v29  ;;  %v2507_v35 = vld [vmem:[%s4208_s19] sm:$0x1] }
 0xeb3   : > { %v2508_v48 = vld [vmem:[%s4209_s25] sm:$0x1] }
 0xeb4   : > { %v2542_v52 = vld [vmem:[%s4210_s29] sm:$0x1] }
 0xeb5   : > { %3163 = vmatpush3.bf16.msra.mxu0 %v3427_v46 }
 0xeb6   : > { %3164 = vmatprep.subr.bf16.mxu0 %v3534_v29 }
 0xeb9   : > { %3165 = vmatpush3.bf16.msra.mxu0 %v3428_v33 }
 0xeba   : > { %3166 = vmatprep.subr.bf16.mxu0 %v3534_v29 }
 0xebd   : > { %3167 = vmatpush3.bf16.msra.mxu0 %v3429_v34 }
 0xebe   : > { %3168 = vmatprep.subr.bf16.mxu0 %v3534_v29 }
 0xec1   : > { %3169 = vmatpush3.bf16.msra.mxu0 %v3430_v36 }
 0xec2   : > { %3170 = vmatprep.subr.bf16.mxu0 %v3534_v29 }
 0xec5   : > { %3171 = vmatpush3.bf16.msra.mxu0 %v3431_v37 }
 0xec6   : > { %3172 = vmatprep.subr.bf16.mxu0 %v3534_v29 }
 0xec9   : > { %3173 = vmatpush3.bf16.msra.mxu0 %v3432_v38 }
 0xeca   : > { %3174 = vmatprep.subr.bf16.mxu0 %v3534_v29 }
 0xecd   : > { %3175 = vmatpush3.bf16.msra.mxu0 %v3433_v39 }
 0xf3a   : > { %v2512_v30 = vpop.xlane.xlu0 %2511 }
 0xf3b   : > { %v2513_v54 = vmul.f32 0.0078125, %v2512_v30 }
 0xf3d   : > { %v2514_v55 = vsub.f32 %v2497_v13, %v2513_v54 }
 0xf3f   : > { %v2515_v31 = vmul.f32 %v2514_v55, %v2514_v55 }
 0xf41   : > { %v2516_v32 = vsel %vm2509_vm4, %v2515_v31, 0.0 }
 0xf42   : > { %2517 = vadd.xlane.f32.xlu0 %v2516_v32 }
 0xfcb   : > { %v2518_v41 = vpop.xlane.xlu0 %2517 }
 0xfcc   : > { %v2519_v42 = vmul.f32 0.0078125, %v2518_v41 }
 0xfce   : > { %v2520_v43 = vadd.f32 1e-05, %v2519_v42 }
 0xfd0   : > { %3434 = vrsqrt.f32 %v2520_v43 }
 0xfdd   : > { %v3435_v44 = vpop.eup %3434 }
 0xfde   : > { %v2522_v47 = vmul.f32 %v3435_v44, %v2514_v55 }
 0xfe0   : > { %v2523_v49 = vmul.f32 %v2522_v47, %v2507_v35 }
 0xfe2   : > { %v2524_v50 = vadd.f32 %v2523_v49, %v2508_v48 }
 0xfe4   : > { %v2525_v51 = vpack.c.bf16 %v2524_v50, %v2524_v50 }
 0xfe6   : > { %3177 = vmatmul.mubr.bf16.vlgmr.msra.gmra.mxu0 %v2525_v51 }
0x10a6   : > { %v2625_v53 = vpop.f32.mrf.mxu0 }
0x10a7   : > { %v2626_v56 = vadd.f32 %v2625_v53, %v2542_v52 }
0x10a8   : > { %v3178_v57 = vpop.f32.mrf.mxu0 }
0x10a9   : > { %2631 = vst [vmem:[%s3756_s16] sm:$0x1] %v2626_v56 }
0x10aa   : > { %v2628_v58 = vpop.f32.mrf.mxu0 }
0x10ac   : > { %v3179_v59 = vpop.f32.mrf.mxu0 }
0x10ad PF: > { %s4211_s0 = sld [smem:[#allocation9_spill]]  ;;  %s2645_s15 = sshll.u32 %s3756_s16, 4  ;;  %s2646_s15 = int_to_ptr.vmem [resolvable:$true] %s2645_s15 }
0x10ae   : > { %s4213_s26 = sld [smem:[#allocation24_spill]]  ;;  %s4215_s23 = sand.u32 1, %s3504_s22  }
0x10af   : > { %s2633_s21 = scalar_lea.sflag [#allocation4], %s4215_s23  ;;  %s3436_s19 = scalar_lea.vmem %s2646_s15, 16 }
0x10b0   : > { %p3437_p2 = scmp.ne.s32.totalorder %s2646_s15, %s3436_s19  ;;  %s3536_s12 = smov [#allocation3]  }
0x10b1   : > { %s3440_s24 = sshll.u32 %s3536_s12, 4  ;;  %s3441_s24 = int_to_ptr.vmem [resolvable:$false] %s3440_s24 }
0x10b2   : > { %p3438_p4 = pnand %p3437_p2, %p3671_p3  ;;  %s3442_s25 = scalar_lea.vmem %s3441_s24, 32 }
0x10b3   : > { %s2943_s5 = sshll.u32 %s4211_s0, 4  ;;  %p3443_p6 = scmp.lt.s32.totalorder %s2646_s15, %s3441_s24 }
0x10b4   : > { %s4214_s17 = smov %s4213_s26  ;;  %s2643_s20 = scalar_lea.hbm %s4213_s26, %s2943_s5 }
0x10b5   : > { %p3439_p5 = pneg %p3438_p4  ;;  %p3444_p7 = scmp.lt.s32.totalorder %s3442_s25, %s3436_s19 }
0x10b7   : > { %p3445_p8 = por %p3444_p7, %p3443_p6 }
0x10b9   : > { %p3446_p10 = pnand %p3445_p8, %p3439_p5 }
0x10bb   : > { %3449 = shalt.err (!%p3446_p10)
}
0x10bc   : > { %s3450_s30 = scalar_lea.hbm %s2643_s20, 16  ;;  %s3454_s29 = scalar_lea.hbm %s4214_s17, 32 }
0x10bd   : > { %p3451_p11 = scmp.ne.s32.totalorder %s2643_s20, %s3450_s30  ;;  %p3455_p0 = scmp.lt.s32.totalorder %s2643_s20, %s4214_s17 }
0x10be   : > { %p3456_p1 = scmp.lt.s32.totalorder %s3454_s29, %s3450_s30 }
0x10bf   : > { %p3452_p12 = pnand %p3451_p11, %p3671_p3 }
0x10c0   : > { %p3457_p2 = por %p3456_p1, %p3455_p0 }
0x10c1   : > { %p3453_p13 = pneg %p3452_p12 }
0x10c3   : > { %p3458_p4 = pnand %p3457_p2, %p3453_p13 }
0x10c5   : > { %3461 = shalt.err (!%p3458_p4)
}
0x10c6   : > { %3194 = dma.vmem_to_hbm [thread:$0]  (%p3671_p3), %s2646_s15, 16, %s2643_s20, %s2633_s21  }
0x10c7 PF: > { %s4216_s14 = sld [smem:[#allocation12_spill]] }
0x10c8   : > { %s4217_s18 = sld [smem:[#allocation6_spill]] }
0x10cd   : > { %p3200_p5 = scmp.ge.s32.totalorder %s4216_s14, 2 }
0x10ce   : > { %s2657_s23 = sand.u32 1, %s4217_s18  }
0x10cf   : > { %p3197_p6 = pnand %p3200_p5, %p3681_p9  ;;  %s2658_s19 = scalar_lea.sflag [#allocation4], %s2657_s23 }
0x10d1   : > { %p3198_p7 = pneg %p3197_p6 }
0x10d3   : > { %3495 = dma.done.wait (%p3198_p7), %s2658_s19, 16  }
0x10d4   : > { %3497 = vsyncadd (%p3198_p7), %s2658_s19, 4294967280  ;;  %s29_s28 = sadd.s32 1, %s4216_s14   ;;  %s4219_s12 = sld [smem:[#allocation7_spill]] }
0x10d5   : > { %p26_p8 = scmp.ge.s32.totalorder %s29_s28, 6   ;;  %s4220_s23 = sld [smem:[#allocation17_spill]] }
0x10d6   : > { %s4221_s24 = sld [smem:[#allocation10_spill]]  ;;  %s4225_s21 = smov %s3504_s22 }
0x10d7   : > { %s4222_s25 = sld [smem:[#allocation11_spill]]  ;;  %28 = sbr.rel (!%p26_p8) target bundleno = 13 (0xd), region = 160 }
0x10d8   : > { %s4223_s26 = sld [smem:[#allocation13_spill]] }
0x10d9   : > { %s4224_s27 = sld [smem:[#allocation15_spill]] }
0x10da   : > { %s4226_s22 = smov %s4219_s12 }
0x10dc   :  { %2662 = vsyncpa [#allocation4], 1 }
0x10dd   :  { %2664 = vsyncpa [#allocation4 + $0x1], 1 }

</bundles_post_ra>
